<compile_context>
chip_gen: v7x
topology: tpu7x:2x2x1
jax: 0.10.0
libtpu: 0.0.40
codegen_flags: <defaults>
</compile_context>

<pallas_src>
import functools

import jax
import jax.numpy as jnp
from jax import lax
from jax.experimental import pallas as pl
from jax.experimental.pallas import tpu as pltpu


def _phase_taps_1d(k, stride, padding, dilation=1):
    """ConvTranspose (direct scatter form): y[o] += x[i]*W[kk] when
    o = i*stride + kk - padding.  Writing o = stride*p + r, the contributions
    to phase r at position p are x[p + off]*W[kk] for each (off, kk) here."""
    assert dilation == 1
    taps = []
    for r in range(stride):
        row = []
        for kk in range(k):
            t = kk - r - padding
            if t % stride == 0:
                off = -(t // stride)          # input index = p + off
                row.append((off, kk))
        taps.append(tuple(row))
    return taps


def _polyphase_kernel(xs_ref, w_ref, o_ref, *, taps2d, n_shift_w, Cin, Cout, kH, kW):
    # xs_ref: (1, n_shifts*Cin, R, 128) VMEM -- shifted copies of x, spatial dims
    #         flattened lane-dense; shift variant s = off_h*n_shift_w + off_w.
    # w_ref : (Cin*Cout*kH*kW,) SMEM        -- PyTorch (Cin,Cout,kH,kW) weights, flat.
    # o_ref : (1, n_phases*Cout, R, 128) VMEM -- phase-major, channel-minor output.
    blk = o_ref.shape[-2:]                    # (R, 128): full 128-lane rows
    for phase, taps in enumerate(taps2d):
        acc = [jnp.zeros(blk, jnp.float32) for _ in range(Cout)]
        for (off_h, kh, off_w, kw) in taps:
            s = off_h * n_shift_w + off_w
            for c in range(Cin):
                # one load per (phase, tap, cin); reused for every output channel
                patch = xs_ref[0, s * Cin + c].astype(jnp.float32)
                for d in range(Cout):
                    widx = ((c * Cout + d) * kH + kh) * kW + kw
                    acc[d] = acc[d] + patch * w_ref[widx]
        for d in range(Cout):
            o_ref[0, phase * Cout + d] = acc[d].astype(o_ref.dtype)


def separable_conv_transpose2d_same(x, weight, *, stride=2, module_dilation=1):
    """Forward of SeparableConvTranspose2d_same.

    x      : (B, Cin, H, W) float32  (NCHW, PyTorch convention)
    weight : (Cin, Cout, kH, kW) float32 (PyTorch ConvTranspose2d weight layout)
    """
    padding = 1                        # hard-coded in the module
    output_padding = module_dilation   # module passes `dilation` into output_padding
    dilation = 1                       # ConvTranspose2d dilation left at default

    B, Cin, H, W = x.shape
    wCin, Cout, kH, kW = weight.shape
    assert wCin == Cin

    Ho = (H - 1) * stride - 2 * padding + dilation * (kH - 1) + output_padding + 1
    Wo = (W - 1) * stride - 2 * padding + dilation * (kW - 1) + output_padding + 1

    # Polyphase path is specialized to the module's valid upsample configuration.
    # TODO(synk): general (stride, kernel_size, padding) combos outside the
    # upsample-by-2 setting are not implemented in this polyphase path.
    assert Ho == stride * H and Wo == stride * W, "polyphase path expects Ho == stride*H"
    assert (H * W) % 128 == 0, "spatial size must flatten to full 128-lane rows"

    taps_h = _phase_taps_1d(kH, stride, padding, dilation)
    taps_w = _phase_taps_1d(kW, stride, padding, dilation)
    offs_h = sorted({off for row in taps_h for (off, _) in row})
    offs_w = sorted({off for row in taps_w for (off, _) in row})
    assert offs_h in ([0], [0, 1]) and offs_w in ([0], [0, 1])
    n_shift_h, n_shift_w = max(offs_h) + 1, max(offs_w) + 1

    # 2-D taps per phase (r_h, r_w) -> phase index r_h*stride + r_w (static).
    taps2d = tuple(
        tuple((oh_, kh, ow_, kw)
              for (oh_, kh) in taps_h[rh]
              for (ow_, kw) in taps_w[rw])
        for rh in range(stride) for rw in range(stride))
    n_phases = stride * stride

    # Pre-stage the shifted copies x[p+off_h, q+off_w] (zero past bottom/right
    # edge); ~32 KiB total for the demo.  This removes every shift / unaligned
    # slice from the kernel and keeps its inputs lane-dense.
    shifted = []
    for oh_ in range(n_shift_h):
        for ow_ in range(n_shift_w):
            xo = jnp.pad(x[:, :, oh_:, ow_:],
                         ((0, 0), (0, 0), (0, oh_), (0, ow_)))
            shifted.append(xo)
    n_shifts = len(shifted)
    R = (H * W) // 128
    xs = jnp.stack(shifted, axis=1).reshape(B, n_shifts * Cin, R, 128)

    w_flat = weight.reshape(-1)

    kernel = functools.partial(_polyphase_kernel, taps2d=taps2d,
                               n_shift_w=n_shift_w, Cin=Cin, Cout=Cout,
                               kH=kH, kW=kW)

    out = pl.pallas_call(
        kernel,
        out_shape=jax.ShapeDtypeStruct((B, n_phases * Cout, R, 128), x.dtype),
        grid_spec=pltpu.PrefetchScalarGridSpec(
            num_scalar_prefetch=0,
            grid=(B,),
            in_specs=[
                pl.BlockSpec((1, n_shifts * Cin, R, 128), lambda b: (b, 0, 0, 0)),
                pl.BlockSpec(memory_space=pltpu.MemorySpace.SMEM),
            ],
            out_specs=pl.BlockSpec((1, n_phases * Cout, R, 128),
                                   lambda b: (b, 0, 0, 0)),
        ),
        compiler_params=pltpu.CompilerParams(
            dimension_semantics=("parallel",)),
    )(xs, w_flat)

    # (B, n_phases*Cout, R, 128) -> (B, Cout, Ho, Wo): un-flatten the spatial
    # block and interleave phases (cheap XLA transpose over ~32 KiB).
    y = out.reshape(B, stride, stride, Cout, H, W)
    y = jnp.transpose(y, (0, 3, 4, 1, 5, 2)).reshape(B, Cout, Ho, Wo)
    return y


if __name__ == "__main__":
    key = jax.random.PRNGKey(0)
    kx, kw = jax.random.split(key)

    B, C, H, W = 2, 4, 16, 16
    kH = kW = 3
    stride, module_dilation = 2, 1   # valid upsample-x2 config (see note at top)

    x = jax.random.normal(kx, (B, C, H, W), dtype=jnp.float32)
    # Deterministic synthetic weight, PyTorch ConvTranspose2d layout (Cin, Cout, kH, kW).
    weight = 0.1 * jax.random.normal(kw, (C, C, kH, kW), dtype=jnp.float32)

    fwd = jax.jit(functools.partial(separable_conv_transpose2d_same,
                                    stride=stride, module_dilation=module_dilation))
    y = jax.block_until_ready(fwd(x, weight))
    assert y.shape == (B, C, 2 * H, 2 * W), y.shape

    # Reference: transposed conv via lhs-dilated regular conv (pure XLA).
    padding, output_padding, dilation = 1, module_dilation, 1
    ph = dilation * (kH - 1) - padding
    pw = dilation * (kW - 1) - padding
    wf = jnp.transpose(weight[:, :, ::-1, ::-1], (2, 3, 0, 1))  # HWIO
    ref = lax.conv_general_dilated(
        x, wf,
        window_strides=(1, 1),
        padding=[(ph, ph + output_padding), (pw, pw + output_padding)],
        lhs_dilation=(stride, stride),
        rhs_dilation=(dilation, dilation),
        dimension_numbers=("NCHW", "HWIO", "NCHW"),
    )
    assert bool(jnp.allclose(y, ref, atol=1e-4, rtol=1e-4)), "mismatch vs XLA reference"

    print("KERNEL_OK")
</pallas_src>

<mosaic_0001>
module attributes {stable_mosaic.version = 11 : i64} {
  func.func @_polyphase_kernel(%arg0: i32, %arg1: memref<1x16x2x128xf32, #tpu.memory_space<vmem>>, %arg2: memref<144xf32, #tpu.memory_space<smem>>, %arg3: memref<1x16x2x128xf32, #tpu.memory_space<vmem>>) attributes {dimension_semantics = [#tpu.dimension_semantics<parallel>], iteration_bounds = array<i64: 2>, scalar_prefetch = 0 : i64, scratch_operands = 0 : i64, tpu.core_type = #tpu.core_type<tc>, window_params = [{transform_indices = @transform_0, window_bounds = array<i64: 1, 16, 2, 128>}, {transform_indices = @transform_1, window_bounds = array<i64: 144>}, {transform_indices = @transform_2, window_bounds = array<i64: 1, 16, 2, 128>}]} {
    %cst = arith.constant 0.000000e+00 : f32
    %0 = vector.broadcast %cst : f32 to vector<2x128xf32>
    %cst_0 = arith.constant 0.000000e+00 : f32
    %1 = vector.broadcast %cst_0 : f32 to vector<2x128xf32>
    %cst_1 = arith.constant 0.000000e+00 : f32
    %2 = vector.broadcast %cst_1 : f32 to vector<2x128xf32>
    %cst_2 = arith.constant 0.000000e+00 : f32
    %3 = vector.broadcast %cst_2 : f32 to vector<2x128xf32>
    %c0 = arith.constant 0 : index
    %c0_3 = arith.constant 0 : index
    %c0_4 = arith.constant 0 : index
    %c0_5 = arith.constant 0 : index
    %4 = vector.load %arg1[%c0, %c0_3, %c0_4, %c0_5] : memref<1x16x2x128xf32, #tpu.memory_space<vmem>>, vector<1x1x2x128xf32>
    %5 = vector.shape_cast %4 : vector<1x1x2x128xf32> to vector<2x128xf32>
    %c4 = arith.constant 4 : index
    %6 = memref.load %arg2[%c4] : memref<144xf32, #tpu.memory_space<smem>>
    %7 = vector.broadcast %6 : f32 to vector<2x128xf32>
    %8 = arith.mulf %5, %7 : vector<2x128xf32>
    %9 = arith.addf %0, %8 : vector<2x128xf32>
    %c13 = arith.constant 13 : index
    %10 = memref.load %arg2[%c13] : memref<144xf32, #tpu.memory_space<smem>>
    %11 = vector.broadcast %10 : f32 to vector<2x128xf32>
    %12 = arith.mulf %5, %11 : vector<2x128xf32>
    %13 = arith.addf %1, %12 : vector<2x128xf32>
    %c22 = arith.constant 22 : index
    %14 = memref.load %arg2[%c22] : memref<144xf32, #tpu.memory_space<smem>>
    %15 = vector.broadcast %14 : f32 to vector<2x128xf32>
    %16 = arith.mulf %5, %15 : vector<2x128xf32>
    %17 = arith.addf %2, %16 : vector<2x128xf32>
    %c31 = arith.constant 31 : index
    %18 = memref.load %arg2[%c31] : memref<144xf32, #tpu.memory_space<smem>>
    %19 = vector.broadcast %18 : f32 to vector<2x128xf32>
    %20 = arith.mulf %5, %19 : vector<2x128xf32>
    %21 = arith.addf %3, %20 : vector<2x128xf32>
    %c0_6 = arith.constant 0 : index
    %c1 = arith.constant 1 : index
    %c0_7 = arith.constant 0 : index
    %c0_8 = arith.constant 0 : index
    %22 = vector.load %arg1[%c0_6, %c1, %c0_7, %c0_8] : memref<1x16x2x128xf32, #tpu.memory_space<vmem>>, vector<1x1x2x128xf32>
    %23 = vector.shape_cast %22 : vector<1x1x2x128xf32> to vector<2x128xf32>
    %c40 = arith.constant 40 : index
    %24 = memref.load %arg2[%c40] : memref<144xf32, #tpu.memory_space<smem>>
    %25 = vector.broadcast %24 : f32 to vector<2x128xf32>
    %26 = arith.mulf %23, %25 : vector<2x128xf32>
    %27 = arith.addf %9, %26 : vector<2x128xf32>
    %c49 = arith.constant 49 : index
    %28 = memref.load %arg2[%c49] : memref<144xf32, #tpu.memory_space<smem>>
    %29 = vector.broadcast %28 : f32 to vector<2x128xf32>
    %30 = arith.mulf %23, %29 : vector<2x128xf32>
    %31 = arith.addf %13, %30 : vector<2x128xf32>
    %c58 = arith.constant 58 : index
    %32 = memref.load %arg2[%c58] : memref<144xf32, #tpu.memory_space<smem>>
    %33 = vector.broadcast %32 : f32 to vector<2x128xf32>
    %34 = arith.mulf %23, %33 : vector<2x128xf32>
    %35 = arith.addf %17, %34 : vector<2x128xf32>
    %c67 = arith.constant 67 : index
    %36 = memref.load %arg2[%c67] : memref<144xf32, #tpu.memory_space<smem>>
    %37 = vector.broadcast %36 : f32 to vector<2x128xf32>
    %38 = arith.mulf %23, %37 : vector<2x128xf32>
    %39 = arith.addf %21, %38 : vector<2x128xf32>
    %c0_9 = arith.constant 0 : index
    %c2 = arith.constant 2 : index
    %c0_10 = arith.constant 0 : index
    %c0_11 = arith.constant 0 : index
    %40 = vector.load %arg1[%c0_9, %c2, %c0_10, %c0_11] : memref<1x16x2x128xf32, #tpu.memory_space<vmem>>, vector<1x1x2x128xf32>
    %41 = vector.shape_cast %40 : vector<1x1x2x128xf32> to vector<2x128xf32>
    %c76 = arith.constant 76 : index
    %42 = memref.load %arg2[%c76] : memref<144xf32, #tpu.memory_space<smem>>
    %43 = vector.broadcast %42 : f32 to vector<2x128xf32>
    %44 = arith.mulf %41, %43 : vector<2x128xf32>
    %45 = arith.addf %27, %44 : vector<2x128xf32>
    %c85 = arith.constant 85 : index
    %46 = memref.load %arg2[%c85] : memref<144xf32, #tpu.memory_space<smem>>
    %47 = vector.broadcast %46 : f32 to vector<2x128xf32>
    %48 = arith.mulf %41, %47 : vector<2x128xf32>
    %49 = arith.addf %31, %48 : vector<2x128xf32>
    %c94 = arith.constant 94 : index
    %50 = memref.load %arg2[%c94] : memref<144xf32, #tpu.memory_space<smem>>
    %51 = vector.broadcast %50 : f32 to vector<2x128xf32>
    %52 = arith.mulf %41, %51 : vector<2x128xf32>
    %53 = arith.addf %35, %52 : vector<2x128xf32>
    %c103 = arith.constant 103 : index
    %54 = memref.load %arg2[%c103] : memref<144xf32, #tpu.memory_space<smem>>
    %55 = vector.broadcast %54 : f32 to vector<2x128xf32>
    %56 = arith.mulf %41, %55 : vector<2x128xf32>
    %57 = arith.addf %39, %56 : vector<2x128xf32>
    %c0_12 = arith.constant 0 : index
    %c3 = arith.constant 3 : index
    %c0_13 = arith.constant 0 : index
    %c0_14 = arith.constant 0 : index
    %58 = vector.load %arg1[%c0_12, %c3, %c0_13, %c0_14] : memref<1x16x2x128xf32, #tpu.memory_space<vmem>>, vector<1x1x2x128xf32>
    %59 = vector.shape_cast %58 : vector<1x1x2x128xf32> to vector<2x128xf32>
    %c112 = arith.constant 112 : index
    %60 = memref.load %arg2[%c112] : memref<144xf32, #tpu.memory_space<smem>>
    %61 = vector.broadcast %60 : f32 to vector<2x128xf32>
    %62 = arith.mulf %59, %61 : vector<2x128xf32>
    %63 = arith.addf %45, %62 : vector<2x128xf32>
    %c121 = arith.constant 121 : index
    %64 = memref.load %arg2[%c121] : memref<144xf32, #tpu.memory_space<smem>>
    %65 = vector.broadcast %64 : f32 to vector<2x128xf32>
    %66 = arith.mulf %59, %65 : vector<2x128xf32>
    %67 = arith.addf %49, %66 : vector<2x128xf32>
    %c130 = arith.constant 130 : index
    %68 = memref.load %arg2[%c130] : memref<144xf32, #tpu.memory_space<smem>>
    %69 = vector.broadcast %68 : f32 to vector<2x128xf32>
    %70 = arith.mulf %59, %69 : vector<2x128xf32>
    %71 = arith.addf %53, %70 : vector<2x128xf32>
    %c139 = arith.constant 139 : index
    %72 = memref.load %arg2[%c139] : memref<144xf32, #tpu.memory_space<smem>>
    %73 = vector.broadcast %72 : f32 to vector<2x128xf32>
    %74 = arith.mulf %59, %73 : vector<2x128xf32>
    %75 = arith.addf %57, %74 : vector<2x128xf32>
    %c0_15 = arith.constant 0 : index
    %c0_16 = arith.constant 0 : index
    %c0_17 = arith.constant 0 : index
    %c0_18 = arith.constant 0 : index
    %76 = vector.load %arg3[%c0_15, %c0_16, %c0_17, %c0_18] : memref<1x16x2x128xf32, #tpu.memory_space<vmem>>, vector<1x1x2x128xf32>
    %77 = vector.shape_cast %76 : vector<1x1x2x128xf32> to vector<2x128xf32>
    %78 = vector.shape_cast %63 : vector<2x128xf32> to vector<1x1x2x128xf32>
    tpu.vector_store %arg3[%c0_15, %c0_16, %c0_17, %c0_18], %78 {strides = array<i32>} : memref<1x16x2x128xf32, #tpu.memory_space<vmem>>, vector<1x1x2x128xf32>,
    %c0_19 = arith.constant 0 : index
    %c1_20 = arith.constant 1 : index
    %c0_21 = arith.constant 0 : index
    %c0_22 = arith.constant 0 : index
    %79 = vector.load %arg3[%c0_19, %c1_20, %c0_21, %c0_22] : memref<1x16x2x128xf32, #tpu.memory_space<vmem>>, vector<1x1x2x128xf32>
    %80 = vector.shape_cast %79 : vector<1x1x2x128xf32> to vector<2x128xf32>
    %81 = vector.shape_cast %67 : vector<2x128xf32> to vector<1x1x2x128xf32>
    tpu.vector_store %arg3[%c0_19, %c1_20, %c0_21, %c0_22], %81 {strides = array<i32>} : memref<1x16x2x128xf32, #tpu.memory_space<vmem>>, vector<1x1x2x128xf32>,
    %c0_23 = arith.constant 0 : index
    %c2_24 = arith.constant 2 : index
    %c0_25 = arith.constant 0 : index
    %c0_26 = arith.constant 0 : index
    %82 = vector.load %arg3[%c0_23, %c2_24, %c0_25, %c0_26] : memref<1x16x2x128xf32, #tpu.memory_space<vmem>>, vector<1x1x2x128xf32>
    %83 = vector.shape_cast %82 : vector<1x1x2x128xf32> to vector<2x128xf32>
    %84 = vector.shape_cast %71 : vector<2x128xf32> to vector<1x1x2x128xf32>
    tpu.vector_store %arg3[%c0_23, %c2_24, %c0_25, %c0_26], %84 {strides = array<i32>} : memref<1x16x2x128xf32, #tpu.memory_space<vmem>>, vector<1x1x2x128xf32>,
    %c0_27 = arith.constant 0 : index
    %c3_28 = arith.constant 3 : index
    %c0_29 = arith.constant 0 : index
    %c0_30 = arith.constant 0 : index
    %85 = vector.load %arg3[%c0_27, %c3_28, %c0_29, %c0_30] : memref<1x16x2x128xf32, #tpu.memory_space<vmem>>, vector<1x1x2x128xf32>
    %86 = vector.shape_cast %85 : vector<1x1x2x128xf32> to vector<2x128xf32>
    %87 = vector.shape_cast %75 : vector<2x128xf32> to vector<1x1x2x128xf32>
    tpu.vector_store %arg3[%c0_27, %c3_28, %c0_29, %c0_30], %87 {strides = array<i32>} : memref<1x16x2x128xf32, #tpu.memory_space<vmem>>, vector<1x1x2x128xf32>,
    %cst_31 = arith.constant 0.000000e+00 : f32
    %88 = vector.broadcast %cst_31 : f32 to vector<2x128xf32>
    %cst_32 = arith.constant 0.000000e+00 : f32
    %89 = vector.broadcast %cst_32 : f32 to vector<2x128xf32>
    %cst_33 = arith.constant 0.000000e+00 : f32
    %90 = vector.broadcast %cst_33 : f32 to vector<2x128xf32>
    %cst_34 = arith.constant 0.000000e+00 : f32
    %91 = vector.broadcast %cst_34 : f32 to vector<2x128xf32>
    %c0_35 = arith.constant 0 : index
    %c4_36 = arith.constant 4 : index
    %c0_37 = arith.constant 0 : index
    %c0_38 = arith.constant 0 : index
    %92 = vector.load %arg1[%c0_35, %c4_36, %c0_37, %c0_38] : memref<1x16x2x128xf32, #tpu.memory_space<vmem>>, vector<1x1x2x128xf32>
    %93 = vector.shape_cast %92 : vector<1x1x2x128xf32> to vector<2x128xf32>
    %c3_39 = arith.constant 3 : index
    %94 = memref.load %arg2[%c3_39] : memref<144xf32, #tpu.memory_space<smem>>
    %95 = vector.broadcast %94 : f32 to vector<2x128xf32>
    %96 = arith.mulf %93, %95 : vector<2x128xf32>
    %97 = arith.addf %88, %96 : vector<2x128xf32>
    %c12 = arith.constant 12 : index
    %98 = memref.load %arg2[%c12] : memref<144xf32, #tpu.memory_space<smem>>
    %99 = vector.broadcast %98 : f32 to vector<2x128xf32>
    %100 = arith.mulf %93, %99 : vector<2x128xf32>
    %101 = arith.addf %89, %100 : vector<2x128xf32>
    %c21 = arith.constant 21 : index
    %102 = memref.load %arg2[%c21] : memref<144xf32, #tpu.memory_space<smem>>
    %103 = vector.broadcast %102 : f32 to vector<2x128xf32>
    %104 = arith.mulf %93, %103 : vector<2x128xf32>
    %105 = arith.addf %90, %104 : vector<2x128xf32>
    %c30 = arith.constant 30 : index
    %106 = memref.load %arg2[%c30] : memref<144xf32, #tpu.memory_space<smem>>
    %107 = vector.broadcast %106 : f32 to vector<2x128xf32>
    %108 = arith.mulf %93, %107 : vector<2x128xf32>
    %109 = arith.addf %91, %108 : vector<2x128xf32>
    %c0_40 = arith.constant 0 : index
    %c5 = arith.constant 5 : index
    %c0_41 = arith.constant 0 : index
    %c0_42 = arith.constant 0 : index
    %110 = vector.load %arg1[%c0_40, %c5, %c0_41, %c0_42] : memref<1x16x2x128xf32, #tpu.memory_space<vmem>>, vector<1x1x2x128xf32>
    %111 = vector.shape_cast %110 : vector<1x1x2x128xf32> to vector<2x128xf32>
    %c39 = arith.constant 39 : index
    %112 = memref.load %arg2[%c39] : memref<144xf32, #tpu.memory_space<smem>>
    %113 = vector.broadcast %112 : f32 to vector<2x128xf32>
    %114 = arith.mulf %111, %113 : vector<2x128xf32>
    %115 = arith.addf %97, %114 : vector<2x128xf32>
    %c48 = arith.constant 48 : index
    %116 = memref.load %arg2[%c48] : memref<144xf32, #tpu.memory_space<smem>>
    %117 = vector.broadcast %116 : f32 to vector<2x128xf32>
    %118 = arith.mulf %111, %117 : vector<2x128xf32>
    %119 = arith.addf %101, %118 : vector<2x128xf32>
    %c57 = arith.constant 57 : index
    %120 = memref.load %arg2[%c57] : memref<144xf32, #tpu.memory_space<smem>>
    %121 = vector.broadcast %120 : f32 to vector<2x128xf32>
    %122 = arith.mulf %111, %121 : vector<2x128xf32>
    %123 = arith.addf %105, %122 : vector<2x128xf32>
    %c66 = arith.constant 66 : index
    %124 = memref.load %arg2[%c66] : memref<144xf32, #tpu.memory_space<smem>>
    %125 = vector.broadcast %124 : f32 to vector<2x128xf32>
    %126 = arith.mulf %111, %125 : vector<2x128xf32>
    %127 = arith.addf %109, %126 : vector<2x128xf32>
    %c0_43 = arith.constant 0 : index
    %c6 = arith.constant 6 : index
    %c0_44 = arith.constant 0 : index
    %c0_45 = arith.constant 0 : index
    %128 = vector.load %arg1[%c0_43, %c6, %c0_44, %c0_45] : memref<1x16x2x128xf32, #tpu.memory_space<vmem>>, vector<1x1x2x128xf32>
    %129 = vector.shape_cast %128 : vector<1x1x2x128xf32> to vector<2x128xf32>
    %c75 = arith.constant 75 : index
    %130 = memref.load %arg2[%c75] : memref<144xf32, #tpu.memory_space<smem>>
    %131 = vector.broadcast %130 : f32 to vector<2x128xf32>
    %132 = arith.mulf %129, %131 : vector<2x128xf32>
    %133 = arith.addf %115, %132 : vector<2x128xf32>
    %c84 = arith.constant 84 : index
    %134 = memref.load %arg2[%c84] : memref<144xf32, #tpu.memory_space<smem>>
    %135 = vector.broadcast %134 : f32 to vector<2x128xf32>
    %136 = arith.mulf %129, %135 : vector<2x128xf32>
    %137 = arith.addf %119, %136 : vector<2x128xf32>
    %c93 = arith.constant 93 : index
    %138 = memref.load %arg2[%c93] : memref<144xf32, #tpu.memory_space<smem>>
    %139 = vector.broadcast %138 : f32 to vector<2x128xf32>
    %140 = arith.mulf %129, %139 : vector<2x128xf32>
    %141 = arith.addf %123, %140 : vector<2x128xf32>
    %c102 = arith.constant 102 : index
    %142 = memref.load %arg2[%c102] : memref<144xf32, #tpu.memory_space<smem>>
    %143 = vector.broadcast %142 : f32 to vector<2x128xf32>
    %144 = arith.mulf %129, %143 : vector<2x128xf32>
    %145 = arith.addf %127, %144 : vector<2x128xf32>
    %c0_46 = arith.constant 0 : index
    %c7 = arith.constant 7 : index
    %c0_47 = arith.constant 0 : index
    %c0_48 = arith.constant 0 : index
    %146 = vector.load %arg1[%c0_46, %c7, %c0_47, %c0_48] : memref<1x16x2x128xf32, #tpu.memory_space<vmem>>, vector<1x1x2x128xf32>
    %147 = vector.shape_cast %146 : vector<1x1x2x128xf32> to vector<2x128xf32>
    %c111 = arith.constant 111 : index
    %148 = memref.load %arg2[%c111] : memref<144xf32, #tpu.memory_space<smem>>
    %149 = vector.broadcast %148 : f32 to vector<2x128xf32>
    %150 = arith.mulf %147, %149 : vector<2x128xf32>
    %151 = arith.addf %133, %150 : vector<2x128xf32>
    %c120 = arith.constant 120 : index
    %152 = memref.load %arg2[%c120] : memref<144xf32, #tpu.memory_space<smem>>
    %153 = vector.broadcast %152 : f32 to vector<2x128xf32>
    %154 = arith.mulf %147, %153 : vector<2x128xf32>
    %155 = arith.addf %137, %154 : vector<2x128xf32>
    %c129 = arith.constant 129 : index
    %156 = memref.load %arg2[%c129] : memref<144xf32, #tpu.memory_space<smem>>
    %157 = vector.broadcast %156 : f32 to vector<2x128xf32>
    %158 = arith.mulf %147, %157 : vector<2x128xf32>
    %159 = arith.addf %141, %158 : vector<2x128xf32>
    %c138 = arith.constant 138 : index
    %160 = memref.load %arg2[%c138] : memref<144xf32, #tpu.memory_space<smem>>
    %161 = vector.broadcast %160 : f32 to vector<2x128xf32>
    %162 = arith.mulf %147, %161 : vector<2x128xf32>
    %163 = arith.addf %145, %162 : vector<2x128xf32>
    %c0_49 = arith.constant 0 : index
    %c0_50 = arith.constant 0 : index
    %c0_51 = arith.constant 0 : index
    %c0_52 = arith.constant 0 : index
    %164 = vector.load %arg1[%c0_49, %c0_50, %c0_51, %c0_52] : memref<1x16x2x128xf32, #tpu.memory_space<vmem>>, vector<1x1x2x128xf32>
    %165 = vector.shape_cast %164 : vector<1x1x2x128xf32> to vector<2x128xf32>
    %c5_53 = arith.constant 5 : index
    %166 = memref.load %arg2[%c5_53] : memref<144xf32, #tpu.memory_space<smem>>
    %167 = vector.broadcast %166 : f32 to vector<2x128xf32>
    %168 = arith.mulf %165, %167 : vector<2x128xf32>
    %169 = arith.addf %151, %168 : vector<2x128xf32>
    %c14 = arith.constant 14 : index
    %170 = memref.load %arg2[%c14] : memref<144xf32, #tpu.memory_space<smem>>
    %171 = vector.broadcast %170 : f32 to vector<2x128xf32>
    %172 = arith.mulf %165, %171 : vector<2x128xf32>
    %173 = arith.addf %155, %172 : vector<2x128xf32>
    %c23 = arith.constant 23 : index
    %174 = memref.load %arg2[%c23] : memref<144xf32, #tpu.memory_space<smem>>
    %175 = vector.broadcast %174 : f32 to vector<2x128xf32>
    %176 = arith.mulf %165, %175 : vector<2x128xf32>
    %177 = arith.addf %159, %176 : vector<2x128xf32>
    %c32 = arith.constant 32 : index
    %178 = memref.load %arg2[%c32] : memref<144xf32, #tpu.memory_space<smem>>
    %179 = vector.broadcast %178 : f32 to vector<2x128xf32>
    %180 = arith.mulf %165, %179 : vector<2x128xf32>
    %181 = arith.addf %163, %180 : vector<2x128xf32>
    %c0_54 = arith.constant 0 : index
    %c1_55 = arith.constant 1 : index
    %c0_56 = arith.constant 0 : index
    %c0_57 = arith.constant 0 : index
    %182 = vector.load %arg1[%c0_54, %c1_55, %c0_56, %c0_57] : memref<1x16x2x128xf32, #tpu.memory_space<vmem>>, vector<1x1x2x128xf32>
    %183 = vector.shape_cast %182 : vector<1x1x2x128xf32> to vector<2x128xf32>
    %c41 = arith.constant 41 : index
    %184 = memref.load %arg2[%c41] : memref<144xf32, #tpu.memory_space<smem>>
    %185 = vector.broadcast %184 : f32 to vector<2x128xf32>
    %186 = arith.mulf %183, %185 : vector<2x128xf32>
    %187 = arith.addf %169, %186 : vector<2x128xf32>
    %c50 = arith.constant 50 : index
    %188 = memref.load %arg2[%c50] : memref<144xf32, #tpu.memory_space<smem>>
    %189 = vector.broadcast %188 : f32 to vector<2x128xf32>
    %190 = arith.mulf %183, %189 : vector<2x128xf32>
    %191 = arith.addf %173, %190 : vector<2x128xf32>
    %c59 = arith.constant 59 : index
    %192 = memref.load %arg2[%c59] : memref<144xf32, #tpu.memory_space<smem>>
    %193 = vector.broadcast %192 : f32 to vector<2x128xf32>
    %194 = arith.mulf %183, %193 : vector<2x128xf32>
    %195 = arith.addf %177, %194 : vector<2x128xf32>
    %c68 = arith.constant 68 : index
    %196 = memref.load %arg2[%c68] : memref<144xf32, #tpu.memory_space<smem>>
    %197 = vector.broadcast %196 : f32 to vector<2x128xf32>
    %198 = arith.mulf %183, %197 : vector<2x128xf32>
    %199 = arith.addf %181, %198 : vector<2x128xf32>
    %c0_58 = arith.constant 0 : index
    %c2_59 = arith.constant 2 : index
    %c0_60 = arith.constant 0 : index
    %c0_61 = arith.constant 0 : index
    %200 = vector.load %arg1[%c0_58, %c2_59, %c0_60, %c0_61] : memref<1x16x2x128xf32, #tpu.memory_space<vmem>>, vector<1x1x2x128xf32>
    %201 = vector.shape_cast %200 : vector<1x1x2x128xf32> to vector<2x128xf32>
    %c77 = arith.constant 77 : index
    %202 = memref.load %arg2[%c77] : memref<144xf32, #tpu.memory_space<smem>>
    %203 = vector.broadcast %202 : f32 to vector<2x128xf32>
    %204 = arith.mulf %201, %203 : vector<2x128xf32>
    %205 = arith.addf %187, %204 : vector<2x128xf32>
    %c86 = arith.constant 86 : index
    %206 = memref.load %arg2[%c86] : memref<144xf32, #tpu.memory_space<smem>>
    %207 = vector.broadcast %206 : f32 to vector<2x128xf32>
    %208 = arith.mulf %201, %207 : vector<2x128xf32>
    %209 = arith.addf %191, %208 : vector<2x128xf32>
    %c95 = arith.constant 95 : index
    %210 = memref.load %arg2[%c95] : memref<144xf32, #tpu.memory_space<smem>>
    %211 = vector.broadcast %210 : f32 to vector<2x128xf32>
    %212 = arith.mulf %201, %211 : vector<2x128xf32>
    %213 = arith.addf %195, %212 : vector<2x128xf32>
    %c104 = arith.constant 104 : index
    %214 = memref.load %arg2[%c104] : memref<144xf32, #tpu.memory_space<smem>>
    %215 = vector.broadcast %214 : f32 to vector<2x128xf32>
    %216 = arith.mulf %201, %215 : vector<2x128xf32>
    %217 = arith.addf %199, %216 : vector<2x128xf32>
    %c0_62 = arith.constant 0 : index
    %c3_63 = arith.constant 3 : index
    %c0_64 = arith.constant 0 : index
    %c0_65 = arith.constant 0 : index
    %218 = vector.load %arg1[%c0_62, %c3_63, %c0_64, %c0_65] : memref<1x16x2x128xf32, #tpu.memory_space<vmem>>, vector<1x1x2x128xf32>
    %219 = vector.shape_cast %218 : vector<1x1x2x128xf32> to vector<2x128xf32>
    %c113 = arith.constant 113 : index
    %220 = memref.load %arg2[%c113] : memref<144xf32, #tpu.memory_space<smem>>
    %221 = vector.broadcast %220 : f32 to vector<2x128xf32>
    %222 = arith.mulf %219, %221 : vector<2x128xf32>
    %223 = arith.addf %205, %222 : vector<2x128xf32>
    %c122 = arith.constant 122 : index
    %224 = memref.load %arg2[%c122] : memref<144xf32, #tpu.memory_space<smem>>
    %225 = vector.broadcast %224 : f32 to vector<2x128xf32>
    %226 = arith.mulf %219, %225 : vector<2x128xf32>
    %227 = arith.addf %209, %226 : vector<2x128xf32>
    %c131 = arith.constant 131 : index
    %228 = memref.load %arg2[%c131] : memref<144xf32, #tpu.memory_space<smem>>
    %229 = vector.broadcast %228 : f32 to vector<2x128xf32>
    %230 = arith.mulf %219, %229 : vector<2x128xf32>
    %231 = arith.addf %213, %230 : vector<2x128xf32>
    %c140 = arith.constant 140 : index
    %232 = memref.load %arg2[%c140] : memref<144xf32, #tpu.memory_space<smem>>
    %233 = vector.broadcast %232 : f32 to vector<2x128xf32>
    %234 = arith.mulf %219, %233 : vector<2x128xf32>
    %235 = arith.addf %217, %234 : vector<2x128xf32>
    %c0_66 = arith.constant 0 : index
    %c4_67 = arith.constant 4 : index
    %c0_68 = arith.constant 0 : index
    %c0_69 = arith.constant 0 : index
    %236 = vector.load %arg3[%c0_66, %c4_67, %c0_68, %c0_69] : memref<1x16x2x128xf32, #tpu.memory_space<vmem>>, vector<1x1x2x128xf32>
    %237 = vector.shape_cast %236 : vector<1x1x2x128xf32> to vector<2x128xf32>
    %238 = vector.shape_cast %223 : vector<2x128xf32> to vector<1x1x2x128xf32>
    tpu.vector_store %arg3[%c0_66, %c4_67, %c0_68, %c0_69], %238 {strides = array<i32>} : memref<1x16x2x128xf32, #tpu.memory_space<vmem>>, vector<1x1x2x128xf32>,
    %c0_70 = arith.constant 0 : index
    %c5_71 = arith.constant 5 : index
    %c0_72 = arith.constant 0 : index
    %c0_73 = arith.constant 0 : index
    %239 = vector.load %arg3[%c0_70, %c5_71, %c0_72, %c0_73] : memref<1x16x2x128xf32, #tpu.memory_space<vmem>>, vector<1x1x2x128xf32>
    %240 = vector.shape_cast %239 : vector<1x1x2x128xf32> to vector<2x128xf32>
    %241 = vector.shape_cast %227 : vector<2x128xf32> to vector<1x1x2x128xf32>
    tpu.vector_store %arg3[%c0_70, %c5_71, %c0_72, %c0_73], %241 {strides = array<i32>} : memref<1x16x2x128xf32, #tpu.memory_space<vmem>>, vector<1x1x2x128xf32>,
    %c0_74 = arith.constant 0 : index
    %c6_75 = arith.constant 6 : index
    %c0_76 = arith.constant 0 : index
    %c0_77 = arith.constant 0 : index
    %242 = vector.load %arg3[%c0_74, %c6_75, %c0_76, %c0_77] : memref<1x16x2x128xf32, #tpu.memory_space<vmem>>, vector<1x1x2x128xf32>
    %243 = vector.shape_cast %242 : vector<1x1x2x128xf32> to vector<2x128xf32>
    %244 = vector.shape_cast %231 : vector<2x128xf32> to vector<1x1x2x128xf32>
    tpu.vector_store %arg3[%c0_74, %c6_75, %c0_76, %c0_77], %244 {strides = array<i32>} : memref<1x16x2x128xf32, #tpu.memory_space<vmem>>, vector<1x1x2x128xf32>,
    %c0_78 = arith.constant 0 : index
    %c7_79 = arith.constant 7 : index
    %c0_80 = arith.constant 0 : index
    %c0_81 = arith.constant 0 : index
    %245 = vector.load %arg3[%c0_78, %c7_79, %c0_80, %c0_81] : memref<1x16x2x128xf32, #tpu.memory_space<vmem>>, vector<1x1x2x128xf32>
    %246 = vector.shape_cast %245 : vector<1x1x2x128xf32> to vector<2x128xf32>
    %247 = vector.shape_cast %235 : vector<2x128xf32> to vector<1x1x2x128xf32>
    tpu.vector_store %arg3[%c0_78, %c7_79, %c0_80, %c0_81], %247 {strides = array<i32>} : memref<1x16x2x128xf32, #tpu.memory_space<vmem>>, vector<1x1x2x128xf32>,
    %cst_82 = arith.constant 0.000000e+00 : f32
    %248 = vector.broadcast %cst_82 : f32 to vector<2x128xf32>
    %cst_83 = arith.constant 0.000000e+00 : f32
    %249 = vector.broadcast %cst_83 : f32 to vector<2x128xf32>
    %cst_84 = arith.constant 0.000000e+00 : f32
    %250 = vector.broadcast %cst_84 : f32 to vector<2x128xf32>
    %cst_85 = arith.constant 0.000000e+00 : f32
    %251 = vector.broadcast %cst_85 : f32 to vector<2x128xf32>
    %c0_86 = arith.constant 0 : index
    %c8 = arith.constant 8 : index
    %c0_87 = arith.constant 0 : index
    %c0_88 = arith.constant 0 : index
    %252 = vector.load %arg1[%c0_86, %c8, %c0_87, %c0_88] : memref<1x16x2x128xf32, #tpu.memory_space<vmem>>, vector<1x1x2x128xf32>
    %253 = vector.shape_cast %252 : vector<1x1x2x128xf32> to vector<2x128xf32>
    %c1_89 = arith.constant 1 : index
    %254 = memref.load %arg2[%c1_89] : memref<144xf32, #tpu.memory_space<smem>>
    %255 = vector.broadcast %254 : f32 to vector<2x128xf32>
    %256 = arith.mulf %253, %255 : vector<2x128xf32>
    %257 = arith.addf %248, %256 : vector<2x128xf32>
    %c10 = arith.constant 10 : index
    %258 = memref.load %arg2[%c10] : memref<144xf32, #tpu.memory_space<smem>>
    %259 = vector.broadcast %258 : f32 to vector<2x128xf32>
    %260 = arith.mulf %253, %259 : vector<2x128xf32>
    %261 = arith.addf %249, %260 : vector<2x128xf32>
    %c19 = arith.constant 19 : index
    %262 = memref.load %arg2[%c19] : memref<144xf32, #tpu.memory_space<smem>>
    %263 = vector.broadcast %262 : f32 to vector<2x128xf32>
    %264 = arith.mulf %253, %263 : vector<2x128xf32>
    %265 = arith.addf %250, %264 : vector<2x128xf32>
    %c28 = arith.constant 28 : index
    %266 = memref.load %arg2[%c28] : memref<144xf32, #tpu.memory_space<smem>>
    %267 = vector.broadcast %266 : f32 to vector<2x128xf32>
    %268 = arith.mulf %253, %267 : vector<2x128xf32>
    %269 = arith.addf %251, %268 : vector<2x128xf32>
    %c0_90 = arith.constant 0 : index
    %c9 = arith.constant 9 : index
    %c0_91 = arith.constant 0 : index
    %c0_92 = arith.constant 0 : index
    %270 = vector.load %arg1[%c0_90, %c9, %c0_91, %c0_92] : memref<1x16x2x128xf32, #tpu.memory_space<vmem>>, vector<1x1x2x128xf32>
    %271 = vector.shape_cast %270 : vector<1x1x2x128xf32> to vector<2x128xf32>
    %c37 = arith.constant 37 : index
    %272 = memref.load %arg2[%c37] : memref<144xf32, #tpu.memory_space<smem>>
    %273 = vector.broadcast %272 : f32 to vector<2x128xf32>
    %274 = arith.mulf %271, %273 : vector<2x128xf32>
    %275 = arith.addf %257, %274 : vector<2x128xf32>
    %c46 = arith.constant 46 : index
    %276 = memref.load %arg2[%c46] : memref<144xf32, #tpu.memory_space<smem>>
    %277 = vector.broadcast %276 : f32 to vector<2x128xf32>
    %278 = arith.mulf %271, %277 : vector<2x128xf32>
    %279 = arith.addf %261, %278 : vector<2x128xf32>
    %c55 = arith.constant 55 : index
    %280 = memref.load %arg2[%c55] : memref<144xf32, #tpu.memory_space<smem>>
    %281 = vector.broadcast %280 : f32 to vector<2x128xf32>
    %282 = arith.mulf %271, %281 : vector<2x128xf32>
    %283 = arith.addf %265, %282 : vector<2x128xf32>
    %c64 = arith.constant 64 : index
    %284 = memref.load %arg2[%c64] : memref<144xf32, #tpu.memory_space<smem>>
    %285 = vector.broadcast %284 : f32 to vector<2x128xf32>
    %286 = arith.mulf %271, %285 : vector<2x128xf32>
    %287 = arith.addf %269, %286 : vector<2x128xf32>
    %c0_93 = arith.constant 0 : index
    %c10_94 = arith.constant 10 : index
    %c0_95 = arith.constant 0 : index
    %c0_96 = arith.constant 0 : index
    %288 = vector.load %arg1[%c0_93, %c10_94, %c0_95, %c0_96] : memref<1x16x2x128xf32, #tpu.memory_space<vmem>>, vector<1x1x2x128xf32>
    %289 = vector.shape_cast %288 : vector<1x1x2x128xf32> to vector<2x128xf32>
    %c73 = arith.constant 73 : index
    %290 = memref.load %arg2[%c73] : memref<144xf32, #tpu.memory_space<smem>>
    %291 = vector.broadcast %290 : f32 to vector<2x128xf32>
    %292 = arith.mulf %289, %291 : vector<2x128xf32>
    %293 = arith.addf %275, %292 : vector<2x128xf32>
    %c82 = arith.constant 82 : index
    %294 = memref.load %arg2[%c82] : memref<144xf32, #tpu.memory_space<smem>>
    %295 = vector.broadcast %294 : f32 to vector<2x128xf32>
    %296 = arith.mulf %289, %295 : vector<2x128xf32>
    %297 = arith.addf %279, %296 : vector<2x128xf32>
    %c91 = arith.constant 91 : index
    %298 = memref.load %arg2[%c91] : memref<144xf32, #tpu.memory_space<smem>>
    %299 = vector.broadcast %298 : f32 to vector<2x128xf32>
    %300 = arith.mulf %289, %299 : vector<2x128xf32>
    %301 = arith.addf %283, %300 : vector<2x128xf32>
    %c100 = arith.constant 100 : index
    %302 = memref.load %arg2[%c100] : memref<144xf32, #tpu.memory_space<smem>>
    %303 = vector.broadcast %302 : f32 to vector<2x128xf32>
    %304 = arith.mulf %289, %303 : vector<2x128xf32>
    %305 = arith.addf %287, %304 : vector<2x128xf32>
    %c0_97 = arith.constant 0 : index
    %c11 = arith.constant 11 : index
    %c0_98 = arith.constant 0 : index
    %c0_99 = arith.constant 0 : index
    %306 = vector.load %arg1[%c0_97, %c11, %c0_98, %c0_99] : memref<1x16x2x128xf32, #tpu.memory_space<vmem>>, vector<1x1x2x128xf32>
    %307 = vector.shape_cast %306 : vector<1x1x2x128xf32> to vector<2x128xf32>
    %c109 = arith.constant 109 : index
    %308 = memref.load %arg2[%c109] : memref<144xf32, #tpu.memory_space<smem>>
    %309 = vector.broadcast %308 : f32 to vector<2x128xf32>
    %310 = arith.mulf %307, %309 : vector<2x128xf32>
    %311 = arith.addf %293, %310 : vector<2x128xf32>
    %c118 = arith.constant 118 : index
    %312 = memref.load %arg2[%c118] : memref<144xf32, #tpu.memory_space<smem>>
    %313 = vector.broadcast %312 : f32 to vector<2x128xf32>
    %314 = arith.mulf %307, %313 : vector<2x128xf32>
    %315 = arith.addf %297, %314 : vector<2x128xf32>
    %c127 = arith.constant 127 : index
    %316 = memref.load %arg2[%c127] : memref<144xf32, #tpu.memory_space<smem>>
    %317 = vector.broadcast %316 : f32 to vector<2x128xf32>
    %318 = arith.mulf %307, %317 : vector<2x128xf32>
    %319 = arith.addf %301, %318 : vector<2x128xf32>
    %c136 = arith.constant 136 : index
    %320 = memref.load %arg2[%c136] : memref<144xf32, #tpu.memory_space<smem>>
    %321 = vector.broadcast %320 : f32 to vector<2x128xf32>
    %322 = arith.mulf %307, %321 : vector<2x128xf32>
    %323 = arith.addf %305, %322 : vector<2x128xf32>
    %c0_100 = arith.constant 0 : index
    %c0_101 = arith.constant 0 : index
    %c0_102 = arith.constant 0 : index
    %c0_103 = arith.constant 0 : index
    %324 = vector.load %arg1[%c0_100, %c0_101, %c0_102, %c0_103] : memref<1x16x2x128xf32, #tpu.memory_space<vmem>>, vector<1x1x2x128xf32>
    %325 = vector.shape_cast %324 : vector<1x1x2x128xf32> to vector<2x128xf32>
    %c7_104 = arith.constant 7 : index
    %326 = memref.load %arg2[%c7_104] : memref<144xf32, #tpu.memory_space<smem>>
    %327 = vector.broadcast %326 : f32 to vector<2x128xf32>
    %328 = arith.mulf %325, %327 : vector<2x128xf32>
    %329 = arith.addf %311, %328 : vector<2x128xf32>
    %c16 = arith.constant 16 : index
    %330 = memref.load %arg2[%c16] : memref<144xf32, #tpu.memory_space<smem>>
    %331 = vector.broadcast %330 : f32 to vector<2x128xf32>
    %332 = arith.mulf %325, %331 : vector<2x128xf32>
    %333 = arith.addf %315, %332 : vector<2x128xf32>
    %c25 = arith.constant 25 : index
    %334 = memref.load %arg2[%c25] : memref<144xf32, #tpu.memory_space<smem>>
    %335 = vector.broadcast %334 : f32 to vector<2x128xf32>
    %336 = arith.mulf %325, %335 : vector<2x128xf32>
    %337 = arith.addf %319, %336 : vector<2x128xf32>
    %c34 = arith.constant 34 : index
    %338 = memref.load %arg2[%c34] : memref<144xf32, #tpu.memory_space<smem>>
    %339 = vector.broadcast %338 : f32 to vector<2x128xf32>
    %340 = arith.mulf %325, %339 : vector<2x128xf32>
    %341 = arith.addf %323, %340 : vector<2x128xf32>
    %c0_105 = arith.constant 0 : index
    %c1_106 = arith.constant 1 : index
    %c0_107 = arith.constant 0 : index
    %c0_108 = arith.constant 0 : index
    %342 = vector.load %arg1[%c0_105, %c1_106, %c0_107, %c0_108] : memref<1x16x2x128xf32, #tpu.memory_space<vmem>>, vector<1x1x2x128xf32>
    %343 = vector.shape_cast %342 : vector<1x1x2x128xf32> to vector<2x128xf32>
    %c43 = arith.constant 43 : index
    %344 = memref.load %arg2[%c43] : memref<144xf32, #tpu.memory_space<smem>>
    %345 = vector.broadcast %344 : f32 to vector<2x128xf32>
    %346 = arith.mulf %343, %345 : vector<2x128xf32>
    %347 = arith.addf %329, %346 : vector<2x128xf32>
    %c52 = arith.constant 52 : index
    %348 = memref.load %arg2[%c52] : memref<144xf32, #tpu.memory_space<smem>>
    %349 = vector.broadcast %348 : f32 to vector<2x128xf32>
    %350 = arith.mulf %343, %349 : vector<2x128xf32>
    %351 = arith.addf %333, %350 : vector<2x128xf32>
    %c61 = arith.constant 61 : index
    %352 = memref.load %arg2[%c61] : memref<144xf32, #tpu.memory_space<smem>>
    %353 = vector.broadcast %352 : f32 to vector<2x128xf32>
    %354 = arith.mulf %343, %353 : vector<2x128xf32>
    %355 = arith.addf %337, %354 : vector<2x128xf32>
    %c70 = arith.constant 70 : index
    %356 = memref.load %arg2[%c70] : memref<144xf32, #tpu.memory_space<smem>>
    %357 = vector.broadcast %356 : f32 to vector<2x128xf32>
    %358 = arith.mulf %343, %357 : vector<2x128xf32>
    %359 = arith.addf %341, %358 : vector<2x128xf32>
    %c0_109 = arith.constant 0 : index
    %c2_110 = arith.constant 2 : index
    %c0_111 = arith.constant 0 : index
    %c0_112 = arith.constant 0 : index
    %360 = vector.load %arg1[%c0_109, %c2_110, %c0_111, %c0_112] : memref<1x16x2x128xf32, #tpu.memory_space<vmem>>, vector<1x1x2x128xf32>
    %361 = vector.shape_cast %360 : vector<1x1x2x128xf32> to vector<2x128xf32>
    %c79 = arith.constant 79 : index
    %362 = memref.load %arg2[%c79] : memref<144xf32, #tpu.memory_space<smem>>
    %363 = vector.broadcast %362 : f32 to vector<2x128xf32>
    %364 = arith.mulf %361, %363 : vector<2x128xf32>
    %365 = arith.addf %347, %364 : vector<2x128xf32>
    %c88 = arith.constant 88 : index
    %366 = memref.load %arg2[%c88] : memref<144xf32, #tpu.memory_space<smem>>
    %367 = vector.broadcast %366 : f32 to vector<2x128xf32>
    %368 = arith.mulf %361, %367 : vector<2x128xf32>
    %369 = arith.addf %351, %368 : vector<2x128xf32>
    %c97 = arith.constant 97 : index
    %370 = memref.load %arg2[%c97] : memref<144xf32, #tpu.memory_space<smem>>
    %371 = vector.broadcast %370 : f32 to vector<2x128xf32>
    %372 = arith.mulf %361, %371 : vector<2x128xf32>
    %373 = arith.addf %355, %372 : vector<2x128xf32>
    %c106 = arith.constant 106 : index
    %374 = memref.load %arg2[%c106] : memref<144xf32, #tpu.memory_space<smem>>
    %375 = vector.broadcast %374 : f32 to vector<2x128xf32>
    %376 = arith.mulf %361, %375 : vector<2x128xf32>
    %377 = arith.addf %359, %376 : vector<2x128xf32>
    %c0_113 = arith.constant 0 : index
    %c3_114 = arith.constant 3 : index
    %c0_115 = arith.constant 0 : index
    %c0_116 = arith.constant 0 : index
    %378 = vector.load %arg1[%c0_113, %c3_114, %c0_115, %c0_116] : memref<1x16x2x128xf32, #tpu.memory_space<vmem>>, vector<1x1x2x128xf32>
    %379 = vector.shape_cast %378 : vector<1x1x2x128xf32> to vector<2x128xf32>
    %c115 = arith.constant 115 : index
    %380 = memref.load %arg2[%c115] : memref<144xf32, #tpu.memory_space<smem>>
    %381 = vector.broadcast %380 : f32 to vector<2x128xf32>
    %382 = arith.mulf %379, %381 : vector<2x128xf32>
    %383 = arith.addf %365, %382 : vector<2x128xf32>
    %c124 = arith.constant 124 : index
    %384 = memref.load %arg2[%c124] : memref<144xf32, #tpu.memory_space<smem>>
    %385 = vector.broadcast %384 : f32 to vector<2x128xf32>
    %386 = arith.mulf %379, %385 : vector<2x128xf32>
    %387 = arith.addf %369, %386 : vector<2x128xf32>
    %c133 = arith.constant 133 : index
    %388 = memref.load %arg2[%c133] : memref<144xf32, #tpu.memory_space<smem>>
    %389 = vector.broadcast %388 : f32 to vector<2x128xf32>
    %390 = arith.mulf %379, %389 : vector<2x128xf32>
    %391 = arith.addf %373, %390 : vector<2x128xf32>
    %c142 = arith.constant 142 : index
    %392 = memref.load %arg2[%c142] : memref<144xf32, #tpu.memory_space<smem>>
    %393 = vector.broadcast %392 : f32 to vector<2x128xf32>
    %394 = arith.mulf %379, %393 : vector<2x128xf32>
    %395 = arith.addf %377, %394 : vector<2x128xf32>
    %c0_117 = arith.constant 0 : index
    %c8_118 = arith.constant 8 : index
    %c0_119 = arith.constant 0 : index
    %c0_120 = arith.constant 0 : index
    %396 = vector.load %arg3[%c0_117, %c8_118, %c0_119, %c0_120] : memref<1x16x2x128xf32, #tpu.memory_space<vmem>>, vector<1x1x2x128xf32>
    %397 = vector.shape_cast %396 : vector<1x1x2x128xf32> to vector<2x128xf32>
    %398 = vector.shape_cast %383 : vector<2x128xf32> to vector<1x1x2x128xf32>
    tpu.vector_store %arg3[%c0_117, %c8_118, %c0_119, %c0_120], %398 {strides = array<i32>} : memref<1x16x2x128xf32, #tpu.memory_space<vmem>>, vector<1x1x2x128xf32>,
    %c0_121 = arith.constant 0 : index
    %c9_122 = arith.constant 9 : index
    %c0_123 = arith.constant 0 : index
    %c0_124 = arith.constant 0 : index
    %399 = vector.load %arg3[%c0_121, %c9_122, %c0_123, %c0_124] : memref<1x16x2x128xf32, #tpu.memory_space<vmem>>, vector<1x1x2x128xf32>
    %400 = vector.shape_cast %399 : vector<1x1x2x128xf32> to vector<2x128xf32>
    %401 = vector.shape_cast %387 : vector<2x128xf32> to vector<1x1x2x128xf32>
    tpu.vector_store %arg3[%c0_121, %c9_122, %c0_123, %c0_124], %401 {strides = array<i32>} : memref<1x16x2x128xf32, #tpu.memory_space<vmem>>, vector<1x1x2x128xf32>,
    %c0_125 = arith.constant 0 : index
    %c10_126 = arith.constant 10 : index
    %c0_127 = arith.constant 0 : index
    %c0_128 = arith.constant 0 : index
    %402 = vector.load %arg3[%c0_125, %c10_126, %c0_127, %c0_128] : memref<1x16x2x128xf32, #tpu.memory_space<vmem>>, vector<1x1x2x128xf32>
    %403 = vector.shape_cast %402 : vector<1x1x2x128xf32> to vector<2x128xf32>
    %404 = vector.shape_cast %391 : vector<2x128xf32> to vector<1x1x2x128xf32>
    tpu.vector_store %arg3[%c0_125, %c10_126, %c0_127, %c0_128], %404 {strides = array<i32>} : memref<1x16x2x128xf32, #tpu.memory_space<vmem>>, vector<1x1x2x128xf32>,
    %c0_129 = arith.constant 0 : index
    %c11_130 = arith.constant 11 : index
    %c0_131 = arith.constant 0 : index
    %c0_132 = arith.constant 0 : index
    %405 = vector.load %arg3[%c0_129, %c11_130, %c0_131, %c0_132] : memref<1x16x2x128xf32, #tpu.memory_space<vmem>>, vector<1x1x2x128xf32>
    %406 = vector.shape_cast %405 : vector<1x1x2x128xf32> to vector<2x128xf32>
    %407 = vector.shape_cast %395 : vector<2x128xf32> to vector<1x1x2x128xf32>
    tpu.vector_store %arg3[%c0_129, %c11_130, %c0_131, %c0_132], %407 {strides = array<i32>} : memref<1x16x2x128xf32, #tpu.memory_space<vmem>>, vector<1x1x2x128xf32>,
    %cst_133 = arith.constant 0.000000e+00 : f32
    %408 = vector.broadcast %cst_133 : f32 to vector<2x128xf32>
    %cst_134 = arith.constant 0.000000e+00 : f32
    %409 = vector.broadcast %cst_134 : f32 to vector<2x128xf32>
    %cst_135 = arith.constant 0.000000e+00 : f32
    %410 = vector.broadcast %cst_135 : f32 to vector<2x128xf32>
    %cst_136 = arith.constant 0.000000e+00 : f32
    %411 = vector.broadcast %cst_136 : f32 to vector<2x128xf32>
    %c0_137 = arith.constant 0 : index
    %c12_138 = arith.constant 12 : index
    %c0_139 = arith.constant 0 : index
    %c0_140 = arith.constant 0 : index
    %412 = vector.load %arg1[%c0_137, %c12_138, %c0_139, %c0_140] : memref<1x16x2x128xf32, #tpu.memory_space<vmem>>, vector<1x1x2x128xf32>
    %413 = vector.shape_cast %412 : vector<1x1x2x128xf32> to vector<2x128xf32>
    %c0_141 = arith.constant 0 : index
    %414 = memref.load %arg2[%c0_141] : memref<144xf32, #tpu.memory_space<smem>>
    %415 = vector.broadcast %414 : f32 to vector<2x128xf32>
    %416 = arith.mulf %413, %415 : vector<2x128xf32>
    %417 = arith.addf %408, %416 : vector<2x128xf32>
    %c9_142 = arith.constant 9 : index
    %418 = memref.load %arg2[%c9_142] : memref<144xf32, #tpu.memory_space<smem>>
    %419 = vector.broadcast %418 : f32 to vector<2x128xf32>
    %420 = arith.mulf %413, %419 : vector<2x128xf32>
    %421 = arith.addf %409, %420 : vector<2x128xf32>
    %c18 = arith.constant 18 : index
    %422 = memref.load %arg2[%c18] : memref<144xf32, #tpu.memory_space<smem>>
    %423 = vector.broadcast %422 : f32 to vector<2x128xf32>
    %424 = arith.mulf %413, %423 : vector<2x128xf32>
    %425 = arith.addf %410, %424 : vector<2x128xf32>
    %c27 = arith.constant 27 : index
    %426 = memref.load %arg2[%c27] : memref<144xf32, #tpu.memory_space<smem>>
    %427 = vector.broadcast %426 : f32 to vector<2x128xf32>
    %428 = arith.mulf %413, %427 : vector<2x128xf32>
    %429 = arith.addf %411, %428 : vector<2x128xf32>
    %c0_143 = arith.constant 0 : index
    %c13_144 = arith.constant 13 : index
    %c0_145 = arith.constant 0 : index
    %c0_146 = arith.constant 0 : index
    %430 = vector.load %arg1[%c0_143, %c13_144, %c0_145, %c0_146] : memref<1x16x2x128xf32, #tpu.memory_space<vmem>>, vector<1x1x2x128xf32>
    %431 = vector.shape_cast %430 : vector<1x1x2x128xf32> to vector<2x128xf32>
    %c36 = arith.constant 36 : index
    %432 = memref.load %arg2[%c36] : memref<144xf32, #tpu.memory_space<smem>>
    %433 = vector.broadcast %432 : f32 to vector<2x128xf32>
    %434 = arith.mulf %431, %433 : vector<2x128xf32>
    %435 = arith.addf %417, %434 : vector<2x128xf32>
    %c45 = arith.constant 45 : index
    %436 = memref.load %arg2[%c45] : memref<144xf32, #tpu.memory_space<smem>>
    %437 = vector.broadcast %436 : f32 to vector<2x128xf32>
    %438 = arith.mulf %431, %437 : vector<2x128xf32>
    %439 = arith.addf %421, %438 : vector<2x128xf32>
    %c54 = arith.constant 54 : index
    %440 = memref.load %arg2[%c54] : memref<144xf32, #tpu.memory_space<smem>>
    %441 = vector.broadcast %440 : f32 to vector<2x128xf32>
    %442 = arith.mulf %431, %441 : vector<2x128xf32>
    %443 = arith.addf %425, %442 : vector<2x128xf32>
    %c63 = arith.constant 63 : index
    %444 = memref.load %arg2[%c63] : memref<144xf32, #tpu.memory_space<smem>>
    %445 = vector.broadcast %444 : f32 to vector<2x128xf32>
    %446 = arith.mulf %431, %445 : vector<2x128xf32>
    %447 = arith.addf %429, %446 : vector<2x128xf32>
    %c0_147 = arith.constant 0 : index
    %c14_148 = arith.constant 14 : index
    %c0_149 = arith.constant 0 : index
    %c0_150 = arith.constant 0 : index
    %448 = vector.load %arg1[%c0_147, %c14_148, %c0_149, %c0_150] : memref<1x16x2x128xf32, #tpu.memory_space<vmem>>, vector<1x1x2x128xf32>
    %449 = vector.shape_cast %448 : vector<1x1x2x128xf32> to vector<2x128xf32>
    %c72 = arith.constant 72 : index
    %450 = memref.load %arg2[%c72] : memref<144xf32, #tpu.memory_space<smem>>
    %451 = vector.broadcast %450 : f32 to vector<2x128xf32>
    %452 = arith.mulf %449, %451 : vector<2x128xf32>
    %453 = arith.addf %435, %452 : vector<2x128xf32>
    %c81 = arith.constant 81 : index
    %454 = memref.load %arg2[%c81] : memref<144xf32, #tpu.memory_space<smem>>
    %455 = vector.broadcast %454 : f32 to vector<2x128xf32>
    %456 = arith.mulf %449, %455 : vector<2x128xf32>
    %457 = arith.addf %439, %456 : vector<2x128xf32>
    %c90 = arith.constant 90 : index
    %458 = memref.load %arg2[%c90] : memref<144xf32, #tpu.memory_space<smem>>
    %459 = vector.broadcast %458 : f32 to vector<2x128xf32>
    %460 = arith.mulf %449, %459 : vector<2x128xf32>
    %461 = arith.addf %443, %460 : vector<2x128xf32>
    %c99 = arith.constant 99 : index
    %462 = memref.load %arg2[%c99] : memref<144xf32, #tpu.memory_space<smem>>
    %463 = vector.broadcast %462 : f32 to vector<2x128xf32>
    %464 = arith.mulf %449, %463 : vector<2x128xf32>
    %465 = arith.addf %447, %464 : vector<2x128xf32>
    %c0_151 = arith.constant 0 : index
    %c15 = arith.constant 15 : index
    %c0_152 = arith.constant 0 : index
    %c0_153 = arith.constant 0 : index
    %466 = vector.load %arg1[%c0_151, %c15, %c0_152, %c0_153] : memref<1x16x2x128xf32, #tpu.memory_space<vmem>>, vector<1x1x2x128xf32>
    %467 = vector.shape_cast %466 : vector<1x1x2x128xf32> to vector<2x128xf32>
    %c108 = arith.constant 108 : index
    %468 = memref.load %arg2[%c108] : memref<144xf32, #tpu.memory_space<smem>>
    %469 = vector.broadcast %468 : f32 to vector<2x128xf32>
    %470 = arith.mulf %467, %469 : vector<2x128xf32>
    %471 = arith.addf %453, %470 : vector<2x128xf32>
    %c117 = arith.constant 117 : index
    %472 = memref.load %arg2[%c117] : memref<144xf32, #tpu.memory_space<smem>>
    %473 = vector.broadcast %472 : f32 to vector<2x128xf32>
    %474 = arith.mulf %467, %473 : vector<2x128xf32>
    %475 = arith.addf %457, %474 : vector<2x128xf32>
    %c126 = arith.constant 126 : index
    %476 = memref.load %arg2[%c126] : memref<144xf32, #tpu.memory_space<smem>>
    %477 = vector.broadcast %476 : f32 to vector<2x128xf32>
    %478 = arith.mulf %467, %477 : vector<2x128xf32>
    %479 = arith.addf %461, %478 : vector<2x128xf32>
    %c135 = arith.constant 135 : index
    %480 = memref.load %arg2[%c135] : memref<144xf32, #tpu.memory_space<smem>>
    %481 = vector.broadcast %480 : f32 to vector<2x128xf32>
    %482 = arith.mulf %467, %481 : vector<2x128xf32>
    %483 = arith.addf %465, %482 : vector<2x128xf32>
    %c0_154 = arith.constant 0 : index
    %c8_155 = arith.constant 8 : index
    %c0_156 = arith.constant 0 : index
    %c0_157 = arith.constant 0 : index
    %484 = vector.load %arg1[%c0_154, %c8_155, %c0_156, %c0_157] : memref<1x16x2x128xf32, #tpu.memory_space<vmem>>, vector<1x1x2x128xf32>
    %485 = vector.shape_cast %484 : vector<1x1x2x128xf32> to vector<2x128xf32>
    %c2_158 = arith.constant 2 : index
    %486 = memref.load %arg2[%c2_158] : memref<144xf32, #tpu.memory_space<smem>>
    %487 = vector.broadcast %486 : f32 to vector<2x128xf32>
    %488 = arith.mulf %485, %487 : vector<2x128xf32>
    %489 = arith.addf %471, %488 : vector<2x128xf32>
    %c11_159 = arith.constant 11 : index
    %490 = memref.load %arg2[%c11_159] : memref<144xf32, #tpu.memory_space<smem>>
    %491 = vector.broadcast %490 : f32 to vector<2x128xf32>
    %492 = arith.mulf %485, %491 : vector<2x128xf32>
    %493 = arith.addf %475, %492 : vector<2x128xf32>
    %c20 = arith.constant 20 : index
    %494 = memref.load %arg2[%c20] : memref<144xf32, #tpu.memory_space<smem>>
    %495 = vector.broadcast %494 : f32 to vector<2x128xf32>
    %496 = arith.mulf %485, %495 : vector<2x128xf32>
    %497 = arith.addf %479, %496 : vector<2x128xf32>
    %c29 = arith.constant 29 : index
    %498 = memref.load %arg2[%c29] : memref<144xf32, #tpu.memory_space<smem>>
    %499 = vector.broadcast %498 : f32 to vector<2x128xf32>
    %500 = arith.mulf %485, %499 : vector<2x128xf32>
    %501 = arith.addf %483, %500 : vector<2x128xf32>
    %c0_160 = arith.constant 0 : index
    %c9_161 = arith.constant 9 : index
    %c0_162 = arith.constant 0 : index
    %c0_163 = arith.constant 0 : index
    %502 = vector.load %arg1[%c0_160, %c9_161, %c0_162, %c0_163] : memref<1x16x2x128xf32, #tpu.memory_space<vmem>>, vector<1x1x2x128xf32>
    %503 = vector.shape_cast %502 : vector<1x1x2x128xf32> to vector<2x128xf32>
    %c38 = arith.constant 38 : index
    %504 = memref.load %arg2[%c38] : memref<144xf32, #tpu.memory_space<smem>>
    %505 = vector.broadcast %504 : f32 to vector<2x128xf32>
    %506 = arith.mulf %503, %505 : vector<2x128xf32>
    %507 = arith.addf %489, %506 : vector<2x128xf32>
    %c47 = arith.constant 47 : index
    %508 = memref.load %arg2[%c47] : memref<144xf32, #tpu.memory_space<smem>>
    %509 = vector.broadcast %508 : f32 to vector<2x128xf32>
    %510 = arith.mulf %503, %509 : vector<2x128xf32>
    %511 = arith.addf %493, %510 : vector<2x128xf32>
    %c56 = arith.constant 56 : index
    %512 = memref.load %arg2[%c56] : memref<144xf32, #tpu.memory_space<smem>>
    %513 = vector.broadcast %512 : f32 to vector<2x128xf32>
    %514 = arith.mulf %503, %513 : vector<2x128xf32>
    %515 = arith.addf %497, %514 : vector<2x128xf32>
    %c65 = arith.constant 65 : index
    %516 = memref.load %arg2[%c65] : memref<144xf32, #tpu.memory_space<smem>>
    %517 = vector.broadcast %516 : f32 to vector<2x128xf32>
    %518 = arith.mulf %503, %517 : vector<2x128xf32>
    %519 = arith.addf %501, %518 : vector<2x128xf32>
    %c0_164 = arith.constant 0 : index
    %c10_165 = arith.constant 10 : index
    %c0_166 = arith.constant 0 : index
    %c0_167 = arith.constant 0 : index
    %520 = vector.load %arg1[%c0_164, %c10_165, %c0_166, %c0_167] : memref<1x16x2x128xf32, #tpu.memory_space<vmem>>, vector<1x1x2x128xf32>
    %521 = vector.shape_cast %520 : vector<1x1x2x128xf32> to vector<2x128xf32>
    %c74 = arith.constant 74 : index
    %522 = memref.load %arg2[%c74] : memref<144xf32, #tpu.memory_space<smem>>
    %523 = vector.broadcast %522 : f32 to vector<2x128xf32>
    %524 = arith.mulf %521, %523 : vector<2x128xf32>
    %525 = arith.addf %507, %524 : vector<2x128xf32>
    %c83 = arith.constant 83 : index
    %526 = memref.load %arg2[%c83] : memref<144xf32, #tpu.memory_space<smem>>
    %527 = vector.broadcast %526 : f32 to vector<2x128xf32>
    %528 = arith.mulf %521, %527 : vector<2x128xf32>
    %529 = arith.addf %511, %528 : vector<2x128xf32>
    %c92 = arith.constant 92 : index
    %530 = memref.load %arg2[%c92] : memref<144xf32, #tpu.memory_space<smem>>
    %531 = vector.broadcast %530 : f32 to vector<2x128xf32>
    %532 = arith.mulf %521, %531 : vector<2x128xf32>
    %533 = arith.addf %515, %532 : vector<2x128xf32>
    %c101 = arith.constant 101 : index
    %534 = memref.load %arg2[%c101] : memref<144xf32, #tpu.memory_space<smem>>
    %535 = vector.broadcast %534 : f32 to vector<2x128xf32>
    %536 = arith.mulf %521, %535 : vector<2x128xf32>
    %537 = arith.addf %519, %536 : vector<2x128xf32>
    %c0_168 = arith.constant 0 : index
    %c11_169 = arith.constant 11 : index
    %c0_170 = arith.constant 0 : index
    %c0_171 = arith.constant 0 : index
    %538 = vector.load %arg1[%c0_168, %c11_169, %c0_170, %c0_171] : memref<1x16x2x128xf32, #tpu.memory_space<vmem>>, vector<1x1x2x128xf32>
    %539 = vector.shape_cast %538 : vector<1x1x2x128xf32> to vector<2x128xf32>
    %c110 = arith.constant 110 : index
    %540 = memref.load %arg2[%c110] : memref<144xf32, #tpu.memory_space<smem>>
    %541 = vector.broadcast %540 : f32 to vector<2x128xf32>
    %542 = arith.mulf %539, %541 : vector<2x128xf32>
    %543 = arith.addf %525, %542 : vector<2x128xf32>
    %c119 = arith.constant 119 : index
    %544 = memref.load %arg2[%c119] : memref<144xf32, #tpu.memory_space<smem>>
    %545 = vector.broadcast %544 : f32 to vector<2x128xf32>
    %546 = arith.mulf %539, %545 : vector<2x128xf32>
    %547 = arith.addf %529, %546 : vector<2x128xf32>
    %c128 = arith.constant 128 : index
    %548 = memref.load %arg2[%c128] : memref<144xf32, #tpu.memory_space<smem>>
    %549 = vector.broadcast %548 : f32 to vector<2x128xf32>
    %550 = arith.mulf %539, %549 : vector<2x128xf32>
    %551 = arith.addf %533, %550 : vector<2x128xf32>
    %c137 = arith.constant 137 : index
    %552 = memref.load %arg2[%c137] : memref<144xf32, #tpu.memory_space<smem>>
    %553 = vector.broadcast %552 : f32 to vector<2x128xf32>
    %554 = arith.mulf %539, %553 : vector<2x128xf32>
    %555 = arith.addf %537, %554 : vector<2x128xf32>
    %c0_172 = arith.constant 0 : index
    %c4_173 = arith.constant 4 : index
    %c0_174 = arith.constant 0 : index
    %c0_175 = arith.constant 0 : index
    %556 = vector.load %arg1[%c0_172, %c4_173, %c0_174, %c0_175] : memref<1x16x2x128xf32, #tpu.memory_space<vmem>>, vector<1x1x2x128xf32>
    %557 = vector.shape_cast %556 : vector<1x1x2x128xf32> to vector<2x128xf32>
    %c6_176 = arith.constant 6 : index
    %558 = memref.load %arg2[%c6_176] : memref<144xf32, #tpu.memory_space<smem>>
    %559 = vector.broadcast %558 : f32 to vector<2x128xf32>
    %560 = arith.mulf %557, %559 : vector<2x128xf32>
    %561 = arith.addf %543, %560 : vector<2x128xf32>
    %c15_177 = arith.constant 15 : index
    %562 = memref.load %arg2[%c15_177] : memref<144xf32, #tpu.memory_space<smem>>
    %563 = vector.broadcast %562 : f32 to vector<2x128xf32>
    %564 = arith.mulf %557, %563 : vector<2x128xf32>
    %565 = arith.addf %547, %564 : vector<2x128xf32>
    %c24 = arith.constant 24 : index
    %566 = memref.load %arg2[%c24] : memref<144xf32, #tpu.memory_space<smem>>
    %567 = vector.broadcast %566 : f32 to vector<2x128xf32>
    %568 = arith.mulf %557, %567 : vector<2x128xf32>
    %569 = arith.addf %551, %568 : vector<2x128xf32>
    %c33 = arith.constant 33 : index
    %570 = memref.load %arg2[%c33] : memref<144xf32, #tpu.memory_space<smem>>
    %571 = vector.broadcast %570 : f32 to vector<2x128xf32>
    %572 = arith.mulf %557, %571 : vector<2x128xf32>
    %573 = arith.addf %555, %572 : vector<2x128xf32>
    %c0_178 = arith.constant 0 : index
    %c5_179 = arith.constant 5 : index
    %c0_180 = arith.constant 0 : index
    %c0_181 = arith.constant 0 : index
    %574 = vector.load %arg1[%c0_178, %c5_179, %c0_180, %c0_181] : memref<1x16x2x128xf32, #tpu.memory_space<vmem>>, vector<1x1x2x128xf32>
    %575 = vector.shape_cast %574 : vector<1x1x2x128xf32> to vector<2x128xf32>
    %c42 = arith.constant 42 : index
    %576 = memref.load %arg2[%c42] : memref<144xf32, #tpu.memory_space<smem>>
    %577 = vector.broadcast %576 : f32 to vector<2x128xf32>
    %578 = arith.mulf %575, %577 : vector<2x128xf32>
    %579 = arith.addf %561, %578 : vector<2x128xf32>
    %c51 = arith.constant 51 : index
    %580 = memref.load %arg2[%c51] : memref<144xf32, #tpu.memory_space<smem>>
    %581 = vector.broadcast %580 : f32 to vector<2x128xf32>
    %582 = arith.mulf %575, %581 : vector<2x128xf32>
    %583 = arith.addf %565, %582 : vector<2x128xf32>
    %c60 = arith.constant 60 : index
    %584 = memref.load %arg2[%c60] : memref<144xf32, #tpu.memory_space<smem>>
    %585 = vector.broadcast %584 : f32 to vector<2x128xf32>
    %586 = arith.mulf %575, %585 : vector<2x128xf32>
    %587 = arith.addf %569, %586 : vector<2x128xf32>
    %c69 = arith.constant 69 : index
    %588 = memref.load %arg2[%c69] : memref<144xf32, #tpu.memory_space<smem>>
    %589 = vector.broadcast %588 : f32 to vector<2x128xf32>
    %590 = arith.mulf %575, %589 : vector<2x128xf32>
    %591 = arith.addf %573, %590 : vector<2x128xf32>
    %c0_182 = arith.constant 0 : index
    %c6_183 = arith.constant 6 : index
    %c0_184 = arith.constant 0 : index
    %c0_185 = arith.constant 0 : index
    %592 = vector.load %arg1[%c0_182, %c6_183, %c0_184, %c0_185] : memref<1x16x2x128xf32, #tpu.memory_space<vmem>>, vector<1x1x2x128xf32>
    %593 = vector.shape_cast %592 : vector<1x1x2x128xf32> to vector<2x128xf32>
    %c78 = arith.constant 78 : index
    %594 = memref.load %arg2[%c78] : memref<144xf32, #tpu.memory_space<smem>>
    %595 = vector.broadcast %594 : f32 to vector<2x128xf32>
    %596 = arith.mulf %593, %595 : vector<2x128xf32>
    %597 = arith.addf %579, %596 : vector<2x128xf32>
    %c87 = arith.constant 87 : index
    %598 = memref.load %arg2[%c87] : memref<144xf32, #tpu.memory_space<smem>>
    %599 = vector.broadcast %598 : f32 to vector<2x128xf32>
    %600 = arith.mulf %593, %599 : vector<2x128xf32>
    %601 = arith.addf %583, %600 : vector<2x128xf32>
    %c96 = arith.constant 96 : index
    %602 = memref.load %arg2[%c96] : memref<144xf32, #tpu.memory_space<smem>>
    %603 = vector.broadcast %602 : f32 to vector<2x128xf32>
    %604 = arith.mulf %593, %603 : vector<2x128xf32>
    %605 = arith.addf %587, %604 : vector<2x128xf32>
    %c105 = arith.constant 105 : index
    %606 = memref.load %arg2[%c105] : memref<144xf32, #tpu.memory_space<smem>>
    %607 = vector.broadcast %606 : f32 to vector<2x128xf32>
    %608 = arith.mulf %593, %607 : vector<2x128xf32>
    %609 = arith.addf %591, %608 : vector<2x128xf32>
    %c0_186 = arith.constant 0 : index
    %c7_187 = arith.constant 7 : index
    %c0_188 = arith.constant 0 : index
    %c0_189 = arith.constant 0 : index
    %610 = vector.load %arg1[%c0_186, %c7_187, %c0_188, %c0_189] : memref<1x16x2x128xf32, #tpu.memory_space<vmem>>, vector<1x1x2x128xf32>
    %611 = vector.shape_cast %610 : vector<1x1x2x128xf32> to vector<2x128xf32>
    %c114 = arith.constant 114 : index
    %612 = memref.load %arg2[%c114] : memref<144xf32, #tpu.memory_space<smem>>
    %613 = vector.broadcast %612 : f32 to vector<2x128xf32>
    %614 = arith.mulf %611, %613 : vector<2x128xf32>
    %615 = arith.addf %597, %614 : vector<2x128xf32>
    %c123 = arith.constant 123 : index
    %616 = memref.load %arg2[%c123] : memref<144xf32, #tpu.memory_space<smem>>
    %617 = vector.broadcast %616 : f32 to vector<2x128xf32>
    %618 = arith.mulf %611, %617 : vector<2x128xf32>
    %619 = arith.addf %601, %618 : vector<2x128xf32>
    %c132 = arith.constant 132 : index
    %620 = memref.load %arg2[%c132] : memref<144xf32, #tpu.memory_space<smem>>
    %621 = vector.broadcast %620 : f32 to vector<2x128xf32>
    %622 = arith.mulf %611, %621 : vector<2x128xf32>
    %623 = arith.addf %605, %622 : vector<2x128xf32>
    %c141 = arith.constant 141 : index
    %624 = memref.load %arg2[%c141] : memref<144xf32, #tpu.memory_space<smem>>
    %625 = vector.broadcast %624 : f32 to vector<2x128xf32>
    %626 = arith.mulf %611, %625 : vector<2x128xf32>
    %627 = arith.addf %609, %626 : vector<2x128xf32>
    %c0_190 = arith.constant 0 : index
    %c0_191 = arith.constant 0 : index
    %c0_192 = arith.constant 0 : index
    %c0_193 = arith.constant 0 : index
    %628 = vector.load %arg1[%c0_190, %c0_191, %c0_192, %c0_193] : memref<1x16x2x128xf32, #tpu.memory_space<vmem>>, vector<1x1x2x128xf32>
    %629 = vector.shape_cast %628 : vector<1x1x2x128xf32> to vector<2x128xf32>
    %c8_194 = arith.constant 8 : index
    %630 = memref.load %arg2[%c8_194] : memref<144xf32, #tpu.memory_space<smem>>
    %631 = vector.broadcast %630 : f32 to vector<2x128xf32>
    %632 = arith.mulf %629, %631 : vector<2x128xf32>
    %633 = arith.addf %615, %632 : vector<2x128xf32>
    %c17 = arith.constant 17 : index
    %634 = memref.load %arg2[%c17] : memref<144xf32, #tpu.memory_space<smem>>
    %635 = vector.broadcast %634 : f32 to vector<2x128xf32>
    %636 = arith.mulf %629, %635 : vector<2x128xf32>
    %637 = arith.addf %619, %636 : vector<2x128xf32>
    %c26 = arith.constant 26 : index
    %638 = memref.load %arg2[%c26] : memref<144xf32, #tpu.memory_space<smem>>
    %639 = vector.broadcast %638 : f32 to vector<2x128xf32>
    %640 = arith.mulf %629, %639 : vector<2x128xf32>
    %641 = arith.addf %623, %640 : vector<2x128xf32>
    %c35 = arith.constant 35 : index
    %642 = memref.load %arg2[%c35] : memref<144xf32, #tpu.memory_space<smem>>
    %643 = vector.broadcast %642 : f32 to vector<2x128xf32>
    %644 = arith.mulf %629, %643 : vector<2x128xf32>
    %645 = arith.addf %627, %644 : vector<2x128xf32>
    %c0_195 = arith.constant 0 : index
    %c1_196 = arith.constant 1 : index
    %c0_197 = arith.constant 0 : index
    %c0_198 = arith.constant 0 : index
    %646 = vector.load %arg1[%c0_195, %c1_196, %c0_197, %c0_198] : memref<1x16x2x128xf32, #tpu.memory_space<vmem>>, vector<1x1x2x128xf32>
    %647 = vector.shape_cast %646 : vector<1x1x2x128xf32> to vector<2x128xf32>
    %c44 = arith.constant 44 : index
    %648 = memref.load %arg2[%c44] : memref<144xf32, #tpu.memory_space<smem>>
    %649 = vector.broadcast %648 : f32 to vector<2x128xf32>
    %650 = arith.mulf %647, %649 : vector<2x128xf32>
    %651 = arith.addf %633, %650 : vector<2x128xf32>
    %c53 = arith.constant 53 : index
    %652 = memref.load %arg2[%c53] : memref<144xf32, #tpu.memory_space<smem>>
    %653 = vector.broadcast %652 : f32 to vector<2x128xf32>
    %654 = arith.mulf %647, %653 : vector<2x128xf32>
    %655 = arith.addf %637, %654 : vector<2x128xf32>
    %c62 = arith.constant 62 : index
    %656 = memref.load %arg2[%c62] : memref<144xf32, #tpu.memory_space<smem>>
    %657 = vector.broadcast %656 : f32 to vector<2x128xf32>
    %658 = arith.mulf %647, %657 : vector<2x128xf32>
    %659 = arith.addf %641, %658 : vector<2x128xf32>
    %c71 = arith.constant 71 : index
    %660 = memref.load %arg2[%c71] : memref<144xf32, #tpu.memory_space<smem>>
    %661 = vector.broadcast %660 : f32 to vector<2x128xf32>
    %662 = arith.mulf %647, %661 : vector<2x128xf32>
    %663 = arith.addf %645, %662 : vector<2x128xf32>
    %c0_199 = arith.constant 0 : index
    %c2_200 = arith.constant 2 : index
    %c0_201 = arith.constant 0 : index
    %c0_202 = arith.constant 0 : index
    %664 = vector.load %arg1[%c0_199, %c2_200, %c0_201, %c0_202] : memref<1x16x2x128xf32, #tpu.memory_space<vmem>>, vector<1x1x2x128xf32>
    %665 = vector.shape_cast %664 : vector<1x1x2x128xf32> to vector<2x128xf32>
    %c80 = arith.constant 80 : index
    %666 = memref.load %arg2[%c80] : memref<144xf32, #tpu.memory_space<smem>>
    %667 = vector.broadcast %666 : f32 to vector<2x128xf32>
    %668 = arith.mulf %665, %667 : vector<2x128xf32>
    %669 = arith.addf %651, %668 : vector<2x128xf32>
    %c89 = arith.constant 89 : index
    %670 = memref.load %arg2[%c89] : memref<144xf32, #tpu.memory_space<smem>>
    %671 = vector.broadcast %670 : f32 to vector<2x128xf32>
    %672 = arith.mulf %665, %671 : vector<2x128xf32>
    %673 = arith.addf %655, %672 : vector<2x128xf32>
    %c98 = arith.constant 98 : index
    %674 = memref.load %arg2[%c98] : memref<144xf32, #tpu.memory_space<smem>>
    %675 = vector.broadcast %674 : f32 to vector<2x128xf32>
    %676 = arith.mulf %665, %675 : vector<2x128xf32>
    %677 = arith.addf %659, %676 : vector<2x128xf32>
    %c107 = arith.constant 107 : index
    %678 = memref.load %arg2[%c107] : memref<144xf32, #tpu.memory_space<smem>>
    %679 = vector.broadcast %678 : f32 to vector<2x128xf32>
    %680 = arith.mulf %665, %679 : vector<2x128xf32>
    %681 = arith.addf %663, %680 : vector<2x128xf32>
    %c0_203 = arith.constant 0 : index
    %c3_204 = arith.constant 3 : index
    %c0_205 = arith.constant 0 : index
    %c0_206 = arith.constant 0 : index
    %682 = vector.load %arg1[%c0_203, %c3_204, %c0_205, %c0_206] : memref<1x16x2x128xf32, #tpu.memory_space<vmem>>, vector<1x1x2x128xf32>
    %683 = vector.shape_cast %682 : vector<1x1x2x128xf32> to vector<2x128xf32>
    %c116 = arith.constant 116 : index
    %684 = memref.load %arg2[%c116] : memref<144xf32, #tpu.memory_space<smem>>
    %685 = vector.broadcast %684 : f32 to vector<2x128xf32>
    %686 = arith.mulf %683, %685 : vector<2x128xf32>
    %687 = arith.addf %669, %686 : vector<2x128xf32>
    %c125 = arith.constant 125 : index
    %688 = memref.load %arg2[%c125] : memref<144xf32, #tpu.memory_space<smem>>
    %689 = vector.broadcast %688 : f32 to vector<2x128xf32>
    %690 = arith.mulf %683, %689 : vector<2x128xf32>
    %691 = arith.addf %673, %690 : vector<2x128xf32>
    %c134 = arith.constant 134 : index
    %692 = memref.load %arg2[%c134] : memref<144xf32, #tpu.memory_space<smem>>
    %693 = vector.broadcast %692 : f32 to vector<2x128xf32>
    %694 = arith.mulf %683, %693 : vector<2x128xf32>
    %695 = arith.addf %677, %694 : vector<2x128xf32>
    %c143 = arith.constant 143 : index
    %696 = memref.load %arg2[%c143] : memref<144xf32, #tpu.memory_space<smem>>
    %697 = vector.broadcast %696 : f32 to vector<2x128xf32>
    %698 = arith.mulf %683, %697 : vector<2x128xf32>
    %699 = arith.addf %681, %698 : vector<2x128xf32>
    %c0_207 = arith.constant 0 : index
    %c12_208 = arith.constant 12 : index
    %c0_209 = arith.constant 0 : index
    %c0_210 = arith.constant 0 : index
    %700 = vector.load %arg3[%c0_207, %c12_208, %c0_209, %c0_210] : memref<1x16x2x128xf32, #tpu.memory_space<vmem>>, vector<1x1x2x128xf32>
    %701 = vector.shape_cast %700 : vector<1x1x2x128xf32> to vector<2x128xf32>
    %702 = vector.shape_cast %687 : vector<2x128xf32> to vector<1x1x2x128xf32>
    tpu.vector_store %arg3[%c0_207, %c12_208, %c0_209, %c0_210], %702 {strides = array<i32>} : memref<1x16x2x128xf32, #tpu.memory_space<vmem>>, vector<1x1x2x128xf32>,
    %c0_211 = arith.constant 0 : index
    %c13_212 = arith.constant 13 : index
    %c0_213 = arith.constant 0 : index
    %c0_214 = arith.constant 0 : index
    %703 = vector.load %arg3[%c0_211, %c13_212, %c0_213, %c0_214] : memref<1x16x2x128xf32, #tpu.memory_space<vmem>>, vector<1x1x2x128xf32>
    %704 = vector.shape_cast %703 : vector<1x1x2x128xf32> to vector<2x128xf32>
    %705 = vector.shape_cast %691 : vector<2x128xf32> to vector<1x1x2x128xf32>
    tpu.vector_store %arg3[%c0_211, %c13_212, %c0_213, %c0_214], %705 {strides = array<i32>} : memref<1x16x2x128xf32, #tpu.memory_space<vmem>>, vector<1x1x2x128xf32>,
    %c0_215 = arith.constant 0 : index
    %c14_216 = arith.constant 14 : index
    %c0_217 = arith.constant 0 : index
    %c0_218 = arith.constant 0 : index
    %706 = vector.load %arg3[%c0_215, %c14_216, %c0_217, %c0_218] : memref<1x16x2x128xf32, #tpu.memory_space<vmem>>, vector<1x1x2x128xf32>
    %707 = vector.shape_cast %706 : vector<1x1x2x128xf32> to vector<2x128xf32>
    %708 = vector.shape_cast %695 : vector<2x128xf32> to vector<1x1x2x128xf32>
    tpu.vector_store %arg3[%c0_215, %c14_216, %c0_217, %c0_218], %708 {strides = array<i32>} : memref<1x16x2x128xf32, #tpu.memory_space<vmem>>, vector<1x1x2x128xf32>,
    %c0_219 = arith.constant 0 : index
    %c15_220 = arith.constant 15 : index
    %c0_221 = arith.constant 0 : index
    %c0_222 = arith.constant 0 : index
    %709 = vector.load %arg3[%c0_219, %c15_220, %c0_221, %c0_222] : memref<1x16x2x128xf32, #tpu.memory_space<vmem>>, vector<1x1x2x128xf32>
    %710 = vector.shape_cast %709 : vector<1x1x2x128xf32> to vector<2x128xf32>
    %711 = vector.shape_cast %699 : vector<2x128xf32> to vector<1x1x2x128xf32>
    tpu.vector_store %arg3[%c0_219, %c15_220, %c0_221, %c0_222], %711 {strides = array<i32>} : memref<1x16x2x128xf32, #tpu.memory_space<vmem>>, vector<1x1x2x128xf32>,
    return
  }
  func.func @transform_0(%arg0: i32) -> (i32, i32, i32, i32) {
    %c0_i32 = arith.constant 0 : i32
    %c0_i32_0 = arith.constant 0 : i32
    %c0_i32_1 = arith.constant 0 : i32
    %c0_i32_2 = arith.constant 0 : i32
    return %arg0, %c0_i32, %c0_i32_0, %c0_i32_1 : i32, i32, i32, i32
  }
  func.func @transform_1(%arg0: i32) -> i32 {
    %c0_i32 = arith.constant 0 : i32
    %c0_i32_0 = arith.constant 0 : i32
    return %c0_i32 : i32
  }
  func.func @transform_2(%arg0: i32) -> (i32, i32, i32, i32) {
    %c0_i32 = arith.constant 0 : i32
    %c0_i32_0 = arith.constant 0 : i32
    %c0_i32_1 = arith.constant 0 : i32
    %c0_i32_2 = arith.constant 0 : i32
    return %arg0, %c0_i32, %c0_i32_0, %c0_i32_1 : i32, i32, i32, i32
  }
}

</mosaic_0001>

<bundles_post_ra>
// kernel: separable_conv_transpose2d_same.1
= control target key start
LH: loop header
LB: loop body
LE: loop exit
PB: predicated region body
PF: predicated region fallthrough
CT: control target
= control target key end

     0   :  { %7 = vsyncpa [#allocation3], 0  ;;  %s1150_s9 = smov 0   ;;  %s1834_s0 = inlined_call_operand.vmem [shape: f32[2,16,2,128], index: 0, kind: input, shape index: {}]   ;;  %s1835_s1 = inlined_call_operand.vmem [shape: f32[144], index: 1, kind: input, shape index: {}]   ;;  %s1836_s2 = inlined_call_operand.vmem [shape: f32[2,16,2,128], index: 2, kind: output, shape index: {}]  }
   0x1 LB: > { %s883_s10 = sadd.s32 4294967295, %s1132_s9   ;;  %p885_p0 = scmp.ge.s32.totalorder %s1132_s9, 1  ;;  %s1132_s9 = sphi %s1150_s9, %s13_s9  }
   0x2   : > { %p91_p1 = scmp.lt.s32.totalorder %s1132_s9, 3  ;;  %s104_s13 = sshll.u32 %s1835_s1, 4  ;;  %s105_s13 = int_to_ptr.vmem [resolvable:$true] %s104_s13 }
   0x3   : > { %p1096_p3 = scmp.eq.s32.totalorder %s883_s10, 0  ;;  %s1107_s15 = scalar_lea.vmem %s105_s13, 32 }
   0x4   : > { %p1161_p2 = pnand %p885_p0, %p91_p1  ;;  %p1108_p6 = scmp.ne.s32.totalorder %s105_s13, %s1107_s15 }
   0x5   : > { %p1115_p10 = scmp.lt.s32.totalorder %s105_s13, %s105_s13  ;;  %p1116_p11 = scmp.lt.s32.totalorder %s1107_s15, %s1107_s15 }
   0x6   : > { %p1092_p4 = pneg %p1161_p2 }
   0x7   : > { %p1117_p12 = por %p1116_p11, %p1115_p10 }
   0x8   : > { %p1093_p5 = pnand %p1096_p3, %p1092_p4 }
   0xa   : > { %p1109_p7 = pneg %p1093_p5 }
   0xc   : > { %p1110_p8 = pnand %p1109_p7, %p1108_p6 }
   0xe   : > { %p1111_p9 = pneg %p1110_p8 }
  0x10   : > { %p1118_p13 = pnand %p1117_p12, %p1111_p9 }
  0x12   : > { %1121 = shalt.err (!%p1118_p13)
}
  0x13   : > { %s1134_s16 = smov [#allocation2]   ;;  %125 = sbr.rel (%p1161_p2) target bundleno = 158 (0x9e), region = 28 }
  0x14   : > { %1095 = dma.vmem_to_smem (!%p1093_p5), %s105_s13, 32, %s1134_s16, [#allocation3]  }
  0x1a   : > { %1127 = dma.done.wait (%p1096_p3), [#allocation3], 32  }
  0x1b   : > { %1129 = vsyncadd (%p1096_p3), [#allocation3], 4294967264 }
  0x1c   : > { %131 = sfence }
  0x1d   : > { %p148_p0 = scmp.lt.s32.totalorder %s883_s10, 1  ;;  %s894_s17 = sld [smem:[#allocation2 + $0x4]] }
  0x1e   : > { %s899_s18 = sld [smem:[#allocation2 + $0x28]]  ;;  %s904_s19 = sld [smem:[#allocation2 + $0x4c]] }
  0x1f   : > { %s1839_s10 = smov (!%p148_p0, %s883_s10), 1  ;;  %s909_s20 = sld [smem:[#allocation2 + $0x70]] }
  0x20   : > { %s895_s21 = sld [smem:[#allocation2 + $0xd]]  ;;  %s1086_s22 = sshll.u32 %s1839_s10, 5 }
  0x21   : > { %s900_s23 = sld [smem:[#allocation2 + $0x31]]  ;;  %s1175_s26 = scalar_lea.vmem %s1834_s0, %s1086_s22 }
  0x22   : > { %s1180_s29 = scalar_lea.vmem %s1836_s2, %s1086_s22  ;;  %v1183_v0 = vld [vmem:[%s1175_s26] sm:$0x3]  ;;  %v898_v2 = vld [vmem:[%s1175_s26 + $0x2] sm:$0x3]  ;;  %v1187_v3 = vld [vmem:[%s1175_s26 + $0x4] sm:$0x3] }
  0x23   : > { %v160_v1 = vstv %s894_s17  ;;  %v908_v7 = vld [vmem:[%s1175_s26 + $0x6] sm:$0x3]  ;;  %s905_s30 = sld [smem:[#allocation2 + $0x55]]  ;;  %s910_s3 = sld [smem:[#allocation2 + $0x79]]  ;;  %v1225_v29 = vld [vmem:[%s1175_s26 + $0x8] sm:$0x3] }
  0x24   : > { %v161_v4 = vmul.f32 %v160_v1, %v1183_v0  ;;  %v178_v5 = vstv %s899_s18  ;;  %v196_v6 = vstv %s904_s19  ;;  %s896_s4 = sld [smem:[#allocation2 + $0x16]]  ;;  %s1192_s5 = sld [smem:[#allocation2 + $0x3a]]  ;;  %v1232_v34 = vld [vmem:[%s1175_s26 + $0xa] sm:$0x3]  ;;  %v1248_v43 = vld [vmem:[%s1175_s26 + $0xc] sm:$0x3] }
  0x25   : > { %v179_v8 = vmul.f32 %v898_v2, %v178_v5  ;;  %v197_v9 = vmul.f32 %v1187_v3, %v196_v6  ;;  %v214_v10 = vstv %s909_s20  ;;  %s1194_s6 = sld [smem:[#allocation2 + $0x5e]]  ;;  %s1196_s7 = sld [smem:[#allocation2 + $0x82]]  ;;  %v1258_v48 = vld [vmem:[%s1175_s26 + $0xe] sm:$0x3]  ;;  %v1268_v53 = vld [vmem:[%s1175_s26] sm:$0x3] }
  0x26   : > { %v164_v11 = vstv %s895_s21  ;;  %v215_v13 = vmul.f32 %v908_v7, %v214_v10  ;;  %s1199_s8 = sld [smem:[#allocation2 + $0x1f]]  ;;  %s1201_s10 = sld [smem:[#allocation2 + $0x43]]  ;;  %v1271_v54 = vld [vmem:[%s1175_s26 + $0x2] sm:$0x3]  ;;  %v1274_v55 = vld [vmem:[%s1175_s26 + $0x4] sm:$0x3] }
  0x27   : > { %v180_v12 = vadd.f32 %v179_v8, %v161_v4  ;;  %v165_v14 = vmul.f32 %v164_v11, %v1183_v0  ;;  %v182_v15 = vstv %s900_s23  ;;  %s1203_s11 = sld [smem:[#allocation2 + $0x67]]  ;;  %s1205_s12 = sld [smem:[#allocation2 + $0x8b]] }
  0x28   : > { %v183_v16 = vmul.f32 %v898_v2, %v182_v15  ;;  %s1207_s13 = sld [smem:[#allocation2 + $0x3]]  ;;  %s1209_s14 = sld [smem:[#allocation2 + $0x27]] }
  0x29   : > { %v198_v17 = vadd.f32 %v197_v9, %v180_v12  ;;  %v200_v19 = vstv %s905_s30  ;;  %v218_v20 = vstv %s910_s3  ;;  %s1211_s15 = sld [smem:[#allocation2 + $0x4b]]  ;;  %s1213_s16 = sld [smem:[#allocation2 + $0x6f]] }
  0x2a   : > { %v184_v18 = vadd.f32 %v183_v16, %v165_v14  ;;  %v201_v22 = vmul.f32 %v1187_v3, %v200_v19  ;;  %v219_v23 = vmul.f32 %v908_v7, %v218_v20  ;;  %v168_v24 = vstv %s896_s4  ;;  %s1216_s17 = sld [smem:[#allocation2 + $0x5]]  ;;  %s1218_s18 = sld [smem:[#allocation2 + $0x29]] }
  0x2b   : > { %v216_v21 = vadd.f32 %v215_v13, %v198_v17  ;;  %v169_v25 = vmul.f32 %v168_v24, %v1183_v0  ;;  %v186_v26 = vstv %s1192_s5  ;;  %v204_v27 = vstv %s1194_s6  ;;  %s1227_s19 = sld [smem:[#allocation2 + $0x4d]]  ;;  %s1234_s20 = sld [smem:[#allocation2 + $0x71]] }
  0x2c   : > { %v222_v28 = vstv %s1196_s7  ;;  %v202_v30 = vadd.f32 %v201_v22, %v184_v18  ;;  %v187_v31 = vmul.f32 %v898_v2, %v186_v26  ;;  %v205_v32 = vmul.f32 %v1187_v3, %v204_v27  ;;  %s1236_s21 = sld [smem:[#allocation2 + $0xc]]  ;;  %s1242_s22 = sld [smem:[#allocation2 + $0x30]] }
  0x2d   : > { %229 = vst [vmem:[%s1180_s29] sm:$0x3] %v216_v21  ;;  %v223_v33 = vmul.f32 %v908_v7, %v222_v28  ;;  %v172_v35 = vstv %s1199_s8  ;;  %v190_v36 = vstv %s1201_s10  ;;  %v208_v37 = vstv %s1203_s11  ;;  %s1244_s23 = sld [smem:[#allocation2 + $0x54]]  ;;  %s1250_s24 = sld [smem:[#allocation2 + $0x78]] }
  0x2e   : > { %v226_v38 = vstv %s1205_s12  ;;  %v220_v39 = vadd.f32 %v219_v23, %v202_v30  ;;  %v188_v40 = vadd.f32 %v187_v31, %v169_v25  ;;  %v173_v41 = vmul.f32 %v172_v35, %v1183_v0  ;;  %s1252_s25 = sld [smem:[#allocation2 + $0xe]]  ;;  %s1260_s27 = sld [smem:[#allocation2 + $0x32]] }
  0x2f   : > { %v191_v42 = vmul.f32 %v898_v2, %v190_v36  ;;  %v209_v44 = vmul.f32 %v1187_v3, %v208_v37  ;;  %v227_v45 = vmul.f32 %v908_v7, %v226_v38  ;;  %v239_v46 = vstv %s1207_s13  ;;  %s1262_s28 = sld [smem:[#allocation2 + $0x56]]  ;;  %s1280_s30 = sld [smem:[#allocation2 + $0x7a]]  ;;  %v1300_v7 = vld [vmem:[%s1175_s26 + $0x6] sm:$0x3] }
  0x30   : > { %v257_v47 = vstv %s1209_s14  ;;  %913 = vst [vmem:[%s1180_s29 + $0x2] sm:$0x3] %v220_v39  ;;  %v206_v49 = vadd.f32 %v205_v32, %v188_v40  ;;  %v240_v51 = vmul.f32 %v1225_v29, %v239_v46  ;;  %v275_v56 = vstv %s1211_s15  ;;  %s1282_s3 = sld [smem:[#allocation2 + $0x15]]  ;;  %s1285_s4 = sld [smem:[#allocation2 + $0x39]] }
  0x31   : > { %v192_v50 = vadd.f32 %v191_v42, %v173_v41  ;;  %v258_v52 = vmul.f32 %v1232_v34, %v257_v47  ;;  %v293_v57 = vstv %s1213_s16  ;;  %v310_v58 = vstv %s1216_s17  ;;  %s1287_s5 = sld [smem:[#allocation2 + $0x5d]]  ;;  %s1292_s6 = sld [smem:[#allocation2 + $0x81]] }
  0x32   : > { %v327_v59 = vstv %s1218_s18  ;;  %v224_v60 = vadd.f32 %v223_v33, %v206_v49  ;;  %v276_v63 = vmul.f32 %v1248_v43, %v275_v56  ;;  %v294_v0 = vmul.f32 %v1258_v48, %v293_v57  ;;  %s1294_s7 = sld [smem:[#allocation2 + $0x17]]  ;;  %s1306_s8 = sld [smem:[#allocation2 + $0x3b]] }
  0x33   : > { %v210_v61 = vadd.f32 %v209_v44, %v192_v50  ;;  %v259_v62 = vadd.f32 %v258_v52, %v240_v51  ;;  %v311_v1 = vmul.f32 %v310_v58, %v1268_v53  ;;  %v344_v2 = vstv %s1227_s19  ;;  %s1308_s10 = sld [smem:[#allocation2 + $0x5f]]  ;;  %s1314_s11 = sld [smem:[#allocation2 + $0x83]] }
  0x34   : > { %914 = vst [vmem:[%s1180_s29 + $0x4] sm:$0x3] %v224_v60  ;;  %v328_v5 = vmul.f32 %v1271_v54, %v327_v59  ;;  %v345_v6 = vmul.f32 %v1274_v55, %v344_v2  ;;  %v361_v8 = vstv %s1234_s20  ;;  %v243_v9 = vstv %s1236_s21  ;;  %s1320_s12 = sld [smem:[#allocation2 + $0x1e]]  ;;  %s1322_s13 = sld [smem:[#allocation2 + $0x42]] }
  0x35   : > { %v228_v3 = vadd.f32 %v227_v45, %v210_v61  ;;  %v277_v4 = vadd.f32 %v276_v63, %v259_v62  ;;  %v261_v10 = vstv %s1242_s22  ;;  %v279_v11 = vstv %s1244_s23  ;;  %s1326_s14 = sld [smem:[#allocation2 + $0x66]]  ;;  %s1332_s15 = sld [smem:[#allocation2 + $0x8a]] }
  0x36   : > { %v244_v13 = vmul.f32 %v1225_v29, %v243_v9  ;;  %v262_v14 = vmul.f32 %v1232_v34, %v261_v10  ;;  %v280_v15 = vmul.f32 %v1248_v43, %v279_v11  ;;  %v297_v16 = vstv %s1250_s24  ;;  %s1334_s16 = sld [smem:[#allocation2 + $0x20]]  ;;  %s1342_s17 = sld [smem:[#allocation2 + $0x44]]  ;;  %v1389_v11 = vld [vmem:[%s1175_s26 + $0x12] sm:$0x3] }
  0x37   : > { %915 = vst [vmem:[%s1180_s29 + $0x6] sm:$0x3] %v228_v3  ;;  %v295_v12 = vadd.f32 %v294_v0, %v277_v4  ;;  %v314_v17 = vstv %s1252_s25  ;;  %v331_v18 = vstv %s1260_s27  ;;  %v348_v19 = vstv %s1262_s28  ;;  %s1344_s18 = sld [smem:[#allocation2 + $0x68]]  ;;  %s1352_s19 = sld [smem:[#allocation2 + $0x1]] }
  0x38   : > { %v362_v21 = vmul.f32 %v1300_v7, %v361_v8  ;;  %v263_v22 = vadd.f32 %v262_v14, %v244_v13  ;;  %v298_v23 = vmul.f32 %v1258_v48, %v297_v16  ;;  %v315_v24 = vmul.f32 %v314_v17, %v1268_v53  ;;  %s1354_s20 = sld [smem:[#allocation2 + $0x25]]  ;;  %s1357_s21 = sld [smem:[#allocation2 + $0x8c]]  ;;  %v1383_v8 = vld [vmem:[%s1175_s26 + $0x10] sm:$0x3] }
  0x39   : > { %v312_v20 = vadd.f32 %v311_v1, %v295_v12  ;;  %v332_v25 = vmul.f32 %v1271_v54, %v331_v18  ;;  %v349_v26 = vmul.f32 %v1274_v55, %v348_v19  ;;  %v247_v27 = vstv %s1282_s3  ;;  %s1359_s22 = sld [smem:[#allocation2 + $0x49]]  ;;  %s1365_s23 = sld [smem:[#allocation2 + $0x6d]]  ;;  %v1408_v19 = vld [vmem:[%s1175_s26 + $0x16] sm:$0x3] }
  0x3a   : > { %v281_v30 = vadd.f32 %v280_v15, %v263_v22  ;;  %v365_v31 = vstv %s1280_s30  ;;  %v248_v32 = vmul.f32 %v1225_v29, %v247_v27  ;;  %v265_v33 = vstv %s1285_s4  ;;  %s1367_s24 = sld [smem:[#allocation2 + $0x7]]  ;;  %s1376_s25 = sld [smem:[#allocation2 + $0x2b]]  ;;  %v1419_v22 = vld [vmem:[%s1175_s26] sm:$0x3] }
  0x3b   : > { %v329_v28 = vadd.f32 %v328_v5, %v312_v20  ;;  %v283_v35 = vstv %s1287_s5  ;;  %v301_v36 = vstv %s1292_s6  ;;  %v318_v37 = vstv %s1294_s7  ;;  %s1378_s27 = sld [smem:[#allocation2 + $0x4f]]  ;;  %s1391_s28 = sld [smem:[#allocation2 + $0xa]] }
  0x3c   : > { %v299_v39 = vadd.f32 %v298_v23, %v281_v30  ;;  %v266_v40 = vmul.f32 %v1232_v34, %v265_v33  ;;  %v284_v41 = vmul.f32 %v1248_v43, %v283_v35  ;;  %v366_v42 = vmul.f32 %v1300_v7, %v365_v31  ;;  %s1393_s30 = sld [smem:[#allocation2 + $0x2e]]  ;;  %s1400_s3 = sld [smem:[#allocation2 + $0x73]] }
  0x3d   : > { %v346_v38 = vadd.f32 %v345_v6, %v329_v28  ;;  %v302_v44 = vmul.f32 %v1258_v48, %v301_v36  ;;  %v335_v45 = vstv %s1306_s8  ;;  %v352_v46 = vstv %s1308_s10  ;;  %s1402_s4 = sld [smem:[#allocation2 + $0x52]]  ;;  %s1410_s5 = sld [smem:[#allocation2 + $0x76]] }
  0x3e   : > { %v316_v49 = vadd.f32 %v315_v24, %v299_v39  ;;  %v267_v50 = vadd.f32 %v266_v40, %v248_v32  ;;  %v319_v51 = vmul.f32 %v318_v37, %v1268_v53  ;;  %v336_v52 = vmul.f32 %v1271_v54, %v335_v45  ;;  %s1412_s6 = sld [smem:[#allocation2 + $0x10]]  ;;  %s1427_s7 = sld [smem:[#allocation2 + $0x34]]  ;;  %v1434_v32 = vld [vmem:[%s1175_s26 + $0x4] sm:$0x3] }
  0x3f   : > { %v363_v47 = vadd.f32 %v362_v21, %v346_v38  ;;  %v369_v56 = vstv %s1314_s11  ;;  %v251_v57 = vstv %s1320_s12  ;;  %v269_v58 = vstv %s1322_s13  ;;  %s1429_s8 = sld [smem:[#allocation2 + $0x58]]  ;;  %s1436_s10 = sld [smem:[#allocation2 + $0x7c]] }
  0x40   : > { %v333_v59 = vadd.f32 %v332_v25, %v316_v49  ;;  %v285_v60 = vadd.f32 %v284_v41, %v267_v50  ;;  %v353_v61 = vmul.f32 %v1274_v55, %v352_v46  ;;  %v252_v62 = vmul.f32 %v1225_v29, %v251_v57  ;;  %s1438_s11 = sld [smem:[#allocation2 + $0x13]]  ;;  %s1443_s12 = sld [smem:[#allocation2 + $0x37]] }
  0x41   : > { %955 = vst [vmem:[%s1180_s29 + $0x8] sm:$0x3] %v363_v47  ;;  %v270_v63 = vmul.f32 %v1232_v34, %v269_v58  ;;  %v287_v0 = vstv %s1326_s14  ;;  %v305_v1 = vstv %s1332_s15  ;;  %v322_v2 = vstv %s1334_s16  ;;  %s1445_s13 = sld [smem:[#allocation2 + $0x5b]]  ;;  %s1452_s14 = sld [smem:[#allocation2 + $0x7f]] }
  0x42   : > { %v350_v3 = vadd.f32 %v349_v26, %v333_v59  ;;  %v303_v4 = vadd.f32 %v302_v44, %v285_v60  ;;  %v370_v5 = vmul.f32 %v1300_v7, %v369_v56  ;;  %v288_v6 = vmul.f32 %v1248_v43, %v287_v0  ;;  %v1425_v26 = vld [vmem:[%s1175_s26 + $0x2] sm:$0x3]  ;;  %s1454_s15 = sld [smem:[#allocation2 + $0x19]]  ;;  %v1458_v47 = vld [vmem:[%s1175_s26 + $0x6] sm:$0x3]  ;;  %s1466_s16 = sld [smem:[#allocation2 + $0x3d]] }
  0x43   : > { %v271_v29 = vadd.f32 %v270_v63, %v252_v62  ;;  %v306_v34 = vmul.f32 %v1258_v48, %v305_v1  ;;  %v339_v9 = vstv %s1342_s17  ;;  %v356_v10 = vstv %s1344_s18  ;;  %v1398_v48 = vld [vmem:[%s1175_s26 + $0x14] sm:$0x3]  ;;  %s1468_s17 = sld [smem:[#allocation2 + $0x61]]  ;;  %s1472_s18 = sld [smem:[#allocation2 + $0x85]] }
  0x44   : > { %v367_v12 = vadd.f32 %v366_v42, %v350_v3  ;;  %v320_v43 = vadd.f32 %v319_v51, %v303_v4  ;;  %v323_v13 = vmul.f32 %v322_v2, %v1268_v53  ;;  %v340_v14 = vmul.f32 %v1271_v54, %v339_v9 }
  0x45   : > { %v289_v15 = vadd.f32 %v288_v6, %v271_v29  ;;  %v357_v16 = vmul.f32 %v1274_v55, %v356_v10  ;;  %v387_v17 = vstv %s1352_s19  ;;  %v405_v18 = vstv %s1354_s20  ;;  %s1474_s19 = sld [smem:[#allocation2 + $0x1c]]  ;;  %s1478_s20 = sld [smem:[#allocation2 + $0x40]] }
  0x46   : > { %956 = vst [vmem:[%s1180_s29 + $0xa] sm:$0x3] %v367_v12  ;;  %v337_v53 = vadd.f32 %v336_v52, %v320_v43  ;;  %v373_v54 = vstv %s1357_s21  ;;  %v388_v20 = vmul.f32 %v1383_v8, %v387_v17  ;;  %v406_v21 = vmul.f32 %v1389_v11, %v405_v18  ;;  %s1480_s21 = sld [smem:[#allocation2 + $0x64]] }
  0x47   : > { %v307_v55 = vadd.f32 %v306_v34, %v289_v15  ;;  %v423_v23 = vstv %s1359_s22  ;;  %v441_v24 = vstv %s1365_s23  ;;  %v458_v25 = vstv %s1367_s24  ;;  %s1484_s22 = sld [smem:[#allocation2 + $0x88]]  ;;  %s1491_s23 = sld [smem:[#allocation2 + $0x22]] }
  0x48   : > { %v354_v27 = vadd.f32 %v353_v61, %v337_v53  ;;  %v407_v28 = vadd.f32 %v406_v21, %v388_v20  ;;  %v424_v30 = vmul.f32 %v1398_v48, %v423_v23  ;;  %v442_v31 = vmul.f32 %v1408_v19, %v441_v24  ;;  %s1493_s24 = sld [smem:[#allocation2 + $0x46]] }
  0x49   : > { %v324_v33 = vadd.f32 %v323_v13, %v307_v55  ;;  %v374_v35 = vmul.f32 %v1300_v7, %v373_v54  ;;  %v475_v36 = vstv %s1376_s25  ;;  %v492_v37 = vstv %s1378_s27  ;;  %s1503_s25 = sld [smem:[#allocation2 + $0x6a]]  ;;  %s1505_s27 = sld [smem:[#allocation2]] }
  0x4a   : > { %v371_v38 = vadd.f32 %v370_v5, %v354_v27  ;;  %v425_v39 = vadd.f32 %v424_v30, %v407_v28  ;;  %v459_v40 = vmul.f32 %v458_v25, %v1419_v22  ;;  %v476_v41 = vmul.f32 %v1425_v26, %v475_v36 }
  0x4b   : > { %v341_v42 = vadd.f32 %v340_v14, %v324_v33  ;;  %v493_v7 = vmul.f32 %v1434_v32, %v492_v37  ;;  %v391_v44 = vstv %s1391_s28  ;;  %v409_v45 = vstv %s1393_s30  ;;  %s1510_s28 = sld [smem:[#allocation2 + $0x24]]  ;;  %s1512_s30 = sld [smem:[#allocation2 + $0x48]] }
  0x4c   : > { %957 = vst [vmem:[%s1180_s29 + $0xc] sm:$0x3] %v371_v38  ;;  %v443_v46 = vadd.f32 %v442_v31, %v425_v39  ;;  %v509_v49 = vstv %s1400_s3  ;;  %v392_v50 = vmul.f32 %v1383_v8, %v391_v44  ;;  %v410_v51 = vmul.f32 %v1389_v11, %v409_v45  ;;  %s1518_s3 = sld [smem:[#allocation2 + $0x6c]] }
  0x4d   : > { %v358_v52 = vadd.f32 %v357_v16, %v341_v42  ;;  %v427_v56 = vstv %s1402_s4  ;;  %v445_v57 = vstv %s1410_s5  ;;  %v462_v58 = vstv %s1412_s6  ;;  %s1523_s4 = sld [smem:[#allocation2 + $0x8e]]  ;;  %s1525_s5 = sld [smem:[#allocation2 + $0x2]] }
  0x4e   : > { %v460_v59 = vadd.f32 %v459_v40, %v443_v46  ;;  %v411_v60 = vadd.f32 %v410_v51, %v392_v50  ;;  %v428_v61 = vmul.f32 %v1398_v48, %v427_v56  ;;  %v446_v62 = vmul.f32 %v1408_v19, %v445_v57  ;;  %s1533_s6 = sld [smem:[#allocation2 + $0x26]]  ;;  %v1537_v50 = vld [vmem:[%s1175_s26 + $0x18] sm:$0x3]  ;;  %v1546_v56 = vld [vmem:[%s1175_s26 + $0x1c] sm:$0x3] }
  0x4f   : > { %v375_v63 = vadd.f32 %v374_v35, %v358_v52  ;;  %v510_v0 = vmul.f32 %v1458_v47, %v509_v49  ;;  %v479_v1 = vstv %s1427_s7  ;;  %v463_v4 = vmul.f32 %v462_v58, %v1419_v22  ;;  %s1548_s7 = sld [smem:[#allocation2 + $0x4a]] }
  0x50   : > { %v477_v2 = vadd.f32 %v476_v41, %v460_v59  ;;  %v429_v3 = vadd.f32 %v428_v61, %v411_v60  ;;  %v496_v5 = vstv %s1429_s8  ;;  %v513_v6 = vstv %s1436_s10  ;;  %s1550_s8 = sld [smem:[#allocation2 + $0x6e]] }
  0x51   : > { %958 = vst [vmem:[%s1180_s29 + $0xe] sm:$0x3] %v375_v63  ;;  %v395_v29 = vstv %s1438_s11  ;;  %v413_v34 = vstv %s1443_s12  ;;  %v431_v9 = vstv %s1445_s13  ;;  %v480_v43 = vmul.f32 %v1425_v26, %v479_v1  ;;  %s1556_s10 = sld [smem:[#allocation2 + $0x6]]  ;;  %s1567_s11 = sld [smem:[#allocation2 + $0x2a]] }
  0x52   : > { %v494_v10 = vadd.f32 %v493_v7, %v477_v2  ;;  %v447_v12 = vadd.f32 %v446_v62, %v429_v3  ;;  %v396_v13 = vmul.f32 %v1383_v8, %v395_v29  ;;  %v414_v14 = vmul.f32 %v1389_v11, %v413_v34  ;;  %v1562_v63 = vld [vmem:[%s1175_s26 + $0x1e] sm:$0x3]  ;;  %s1569_s12 = sld [smem:[#allocation2 + $0x4e]]  ;;  %s1576_s13 = sld [smem:[#allocation2 + $0x9]] }
  0x53   : > { %v432_v15 = vmul.f32 %v1398_v48, %v431_v9  ;;  %v449_v16 = vstv %s1452_s14  ;;  %v466_v17 = vstv %s1454_s15  ;;  %v497_v54 = vmul.f32 %v1434_v32, %v496_v5  ;;  %v1573_v5 = vld [vmem:[%s1175_s26 + $0x10] sm:$0x3]  ;;  %s1578_s14 = sld [smem:[#allocation2 + $0x2d]]  ;;  %s1582_s15 = sld [smem:[#allocation2 + $0x72]] }
  0x54   : > { %v511_v18 = vadd.f32 %v510_v0, %v494_v10  ;;  %v464_v53 = vadd.f32 %v463_v4, %v447_v12  ;;  %v514_v20 = vmul.f32 %v1458_v47, %v513_v6  ;;  %v415_v21 = vadd.f32 %v414_v14, %v396_v13 }
  0x55   : > { %v450_v55 = vmul.f32 %v1408_v19, %v449_v16  ;;  %v467_v23 = vmul.f32 %v466_v17, %v1419_v22  ;;  %v483_v24 = vstv %s1466_s16  ;;  %v500_v28 = vstv %s1468_s17  ;;  %s1584_s16 = sld [smem:[#allocation2 + $0x51]]  ;;  %s1590_s17 = sld [smem:[#allocation2 + $0x75]]  ;;  %v1597_v17 = vld [vmem:[%s1175_s26 + $0x14] sm:$0x3] }
  0x56   : > { %998 = vst [vmem:[%s1180_s29 + $0x10] sm:$0x3] %v511_v18  ;;  %v481_v25 = vadd.f32 %v480_v43, %v464_v53  ;;  %v484_v27 = vmul.f32 %v1425_v26, %v483_v24  ;;  %v517_v30 = vstv %s1472_s18  ;;  %v433_v31 = vadd.f32 %v432_v15, %v415_v21  ;;  %v1587_v43 = vld [vmem:[%s1175_s26 + $0x12] sm:$0x3]  ;;  %s1592_s18 = sld [smem:[#allocation2 + $0xb]] }
  0x57   : > { %v399_v33 = vstv %s1474_s19  ;;  %v417_v35 = vstv %s1478_s20  ;;  %v435_v36 = vstv %s1480_s21  ;;  %v453_v42 = vstv %s1484_s22  ;;  %s1599_s19 = sld [smem:[#allocation2 + $0x8]]  ;;  %s1607_s20 = sld [smem:[#allocation2 + $0x2c]] }
  0x58   : > { %v498_v37 = vadd.f32 %v497_v54, %v481_v25  ;;  %v400_v38 = vmul.f32 %v1383_v8, %v399_v33  ;;  %v418_v39 = vmul.f32 %v1389_v11, %v417_v35  ;;  %v436_v40 = vmul.f32 %v1398_v48, %v435_v36  ;;  %v1540_v8 = vld [vmem:[%s1175_s26 + $0x1a] sm:$0x3]  ;;  %v1604_v53 = vld [vmem:[%s1175_s26 + $0x16] sm:$0x3]  ;;  %s1609_s21 = sld [smem:[#allocation2 + $0x2f]]  ;;  %s1616_s22 = sld [smem:[#allocation2 + $0x50]] }
  0x59   : > { %v451_v41 = vadd.f32 %v450_v55, %v433_v31  ;;  %v470_v7 = vstv %s1491_s23  ;;  %v487_v44 = vstv %s1493_s24  ;;  %v454_v49 = vmul.f32 %v1408_v19, %v453_v42  ;;  %v1613_v55 = vld [vmem:[%s1175_s26 + $0x8] sm:$0x3]  ;;  %s1618_s23 = sld [smem:[#allocation2 + $0x53]]  ;;  %s1622_s24 = sld [smem:[#allocation2 + $0x77]] }
  0x5a   : > { %v515_v45 = vadd.f32 %v514_v20, %v498_v37  ;;  %v419_v46 = vadd.f32 %v418_v39, %v400_v38  ;;  %v501_v48 = vmul.f32 %v1434_v32, %v500_v28  ;;  %v518_v51 = vmul.f32 %v1458_v47, %v517_v30  ;;  %v1630_v37 = vld [vmem:[%s1175_s26 + $0xa] sm:$0x3] }
  0x5b   : > { %v468_v11 = vadd.f32 %v467_v23, %v451_v41  ;;  %v471_v52 = vmul.f32 %v470_v7, %v1419_v22  ;;  %v488_v57 = vmul.f32 %v1425_v26, %v487_v44  ;;  %v504_v58 = vstv %s1503_s25  ;;  %s1633_s25 = sld [smem:[#allocation2 + $0x74]] }
  0x5c   : > { %999 = vst [vmem:[%s1180_s29 + $0x12] sm:$0x3] %v515_v45  ;;  %v437_v19 = vadd.f32 %v436_v40, %v419_v46  ;;  %v535_v59 = vstv %s1505_s27  ;;  %v553_v61 = vstv %s1510_s28  ;;  %v571_v62 = vstv %s1512_s30  ;;  %s1637_s27 = sld [smem:[#allocation2 + $0xf]]  ;;  %s1643_s28 = sld [smem:[#allocation2 + $0x12]] }
  0x5d   : > { %v485_v60 = vadd.f32 %v484_v27, %v468_v11  ;;  %v536_v22 = vmul.f32 %v1537_v50, %v535_v59  ;;  %v554_v1 = vmul.f32 %v1540_v8, %v553_v61  ;;  %v572_v2 = vmul.f32 %v1546_v56, %v571_v62  ;;  %s1645_s30 = sld [smem:[#allocation2 + $0x36]]  ;;  %v1648_v46 = vld [vmem:[%s1175_s26 + $0xc] sm:$0x3]  ;;  %v1674_v61 = vld [vmem:[%s1175_s26 + $0x4] sm:$0x3] }
  0x5e   : > { %v455_v0 = vadd.f32 %v454_v49, %v437_v19  ;;  %v589_v26 = vstv %s1518_s3  ;;  %v521_v4 = vstv %s1523_s4  ;;  %v606_v6 = vstv %s1525_s5  ;;  %s1652_s3 = sld [smem:[#allocation2 + $0x33]]  ;;  %s1654_s4 = sld [smem:[#allocation2 + $0x57]] }
  0x5f   : > { %v502_v3 = vadd.f32 %v501_v48, %v485_v60  ;;  %v505_v34 = vmul.f32 %v1434_v32, %v504_v58  ;;  %v555_v9 = vadd.f32 %v554_v1, %v536_v22  ;;  %v590_v10 = vmul.f32 %v1562_v63, %v589_v26  ;;  %s1663_s5 = sld [smem:[#allocation2 + $0x5a]]  ;;  %v1668_v60 = vld [vmem:[%s1175_s26] sm:$0x3]  ;;  %v1671_v22 = vld [vmem:[%s1175_s26 + $0x2] sm:$0x3] }
  0x60   : > { %v472_v29 = vadd.f32 %v471_v52, %v455_v0  ;;  %v623_v13 = vstv %s1533_s6  ;;  %v522_v14 = vmul.f32 %v1458_v47, %v521_v4  ;;  %v607_v16 = vmul.f32 %v1573_v5, %v606_v6  ;;  %v1658_v52 = vld [vmem:[%s1175_s26 + $0xe] sm:$0x3]  ;;  %s1665_s6 = sld [smem:[#allocation2 + $0x7e]] }
  0x61   : > { %v519_v12 = vadd.f32 %v518_v51, %v502_v3  ;;  %v573_v15 = vadd.f32 %v572_v2, %v555_v9  ;;  %v640_v18 = vstv %s1548_s7  ;;  %v657_v54 = vstv %s1550_s8  ;;  %s1680_s7 = sld [smem:[#allocation2 + $0x7b]]  ;;  %s1682_s8 = sld [smem:[#allocation2 + $0x14]] }
  0x62   : > { %v489_v32 = vadd.f32 %v488_v57, %v472_v29  ;;  %v624_v21 = vmul.f32 %v1587_v43, %v623_v13  ;;  %v674_v23 = vstv %s1556_s10  ;;  %v641_v27 = vmul.f32 %v1597_v17, %v640_v18  ;;  %s1686_s10 = sld [smem:[#allocation2 + $0x38]] }
  0x63   : > { %1000 = vst [vmem:[%s1180_s29 + $0x14] sm:$0x3] %v519_v12  ;;  %v591_v20 = vadd.f32 %v590_v10, %v573_v15  ;;  %v658_v28 = vmul.f32 %v1604_v53, %v657_v54  ;;  %v675_v30 = vmul.f32 %v1613_v55, %v674_v23  ;;  %v691_v31 = vstv %s1567_s11  ;;  %s1694_s11 = sld [smem:[#allocation2 + $0x11]] }
  0x64   : > { %v506_v47 = vadd.f32 %v505_v34, %v489_v32  ;;  %v539_v33 = vstv %s1576_s13  ;;  %v557_v35 = vstv %s1578_s14  ;;  %v708_v38 = vstv %s1569_s12  ;;  %s1696_s12 = sld [smem:[#allocation2 + $0x5c]]  ;;  %s1700_s13 = sld [smem:[#allocation2 + $0x35]] }
  0x65   : > { %v608_v25 = vadd.f32 %v607_v16, %v591_v20  ;;  %v540_v39 = vmul.f32 %v1537_v50, %v539_v33  ;;  %v558_v40 = vmul.f32 %v1540_v8, %v557_v35  ;;  %v725_v41 = vstv %s1582_s15  ;;  %s1706_s14 = sld [smem:[#allocation2 + $0x59]]  ;;  %s1708_s15 = sld [smem:[#allocation2 + $0x80]]  ;;  %v1717_v33 = vld [vmem:[%s1175_s26 + $0x6] sm:$0x3] }
  0x66   : > { %v523_v24 = vadd.f32 %v522_v14, %v506_v47  ;;  %v575_v42 = vstv %s1584_s16  ;;  %v593_v7 = vstv %s1590_s17  ;;  %v610_v44 = vstv %s1592_s18  ;;  %s1714_s16 = sld [smem:[#allocation2 + $0x18]]  ;;  %s1720_s17 = sld [smem:[#allocation2 + $0x7d]] }
  0x67   : > { %v625_v36 = vadd.f32 %v624_v21, %v608_v25  ;;  %v559_v49 = vadd.f32 %v558_v40, %v540_v39  ;;  %v576_v11 = vmul.f32 %v1546_v56, %v575_v42  ;;  %v594_v48 = vmul.f32 %v1562_v63, %v593_v7  ;;  %s1726_s18 = sld [smem:[#allocation2 + $0x1b]]  ;;  %s1730_s26 = sld [smem:[#allocation2 + $0x3c]] }
  0x68   : > { %1001 = vst [vmem:[%s1180_s29 + $0x16] sm:$0x3] %v523_v24  ;;  %v692_v51 = vmul.f32 %v1630_v37, %v691_v31  ;;  %v742_v19 = vstv %s1599_s19  ;;  %v759_v57 = vstv %s1607_s20  ;;  %v627_v58 = vstv %s1609_s21  ;;  %s1732_s19 = sld [smem:[#allocation2 + $0x3f]]  ;;  %s1737_s20 = sld [smem:[#allocation2 + $0x63]] }
  0x69   : > { %v642_v45 = vadd.f32 %v641_v27, %v625_v36  ;;  %v776_v62 = vstv %s1616_s22  ;;  %v577_v0 = vadd.f32 %v576_v11, %v559_v49  ;;  %v611_v1 = vmul.f32 %v1573_v5, %v610_v44  ;;  %s1739_s21 = sld [smem:[#allocation2 + $0x87]]  ;;  %s1743_s22 = sld [smem:[#allocation2 + $0x60]] }
  0x6a   : > { %v709_v2 = vmul.f32 %v1648_v46, %v708_v38  ;;  %v644_v26 = vstv %s1618_s23  ;;  %v628_v6 = vmul.f32 %v1587_v43, %v627_v58  ;;  %v661_v29 = vstv %s1622_s24  ;;  %s1748_s23 = sld [smem:[#allocation2 + $0x1d]]  ;;  %s1752_s24 = sld [smem:[#allocation2 + $0x84]] }
  0x6b   : > { %v659_v59 = vadd.f32 %v658_v28, %v642_v45  ;;  %v595_v4 = vadd.f32 %v594_v48, %v577_v0  ;;  %v726_v34 = vmul.f32 %v1658_v52, %v725_v41  ;;  %v743_v9 = vmul.f32 %v742_v19, %v1668_v60 }
  0x6c   : > { %v760_v10 = vmul.f32 %v1671_v22, %v759_v57  ;;  %v777_v12 = vmul.f32 %v1674_v61, %v776_v62  ;;  %v793_v32 = vstv %s1633_s25  ;;  %v645_v15 = vmul.f32 %v1597_v17, %v644_v26  ;;  %s1757_s25 = sld [smem:[#allocation2 + $0x41]] }
  0x6d   : > { %v676_v3 = vadd.f32 %v675_v30, %v659_v59  ;;  %v612_v14 = vadd.f32 %v611_v1, %v595_v4  ;;  %v662_v16 = vmul.f32 %v1604_v53, %v661_v29  ;;  %v678_v18 = vstv %s1637_s27  ;;  %s1761_s27 = sld [smem:[#allocation2 + $0x1a]] }
  0x6e   : > { %v543_v54 = vstv %s1643_s28  ;;  %v561_v47 = vstv %s1645_s30  ;;  %v695_v23 = vstv %s1652_s3  ;;  %v712_v24 = vstv %s1654_s4  ;;  %s1766_s28 = sld [smem:[#allocation2 + $0x65]]  ;;  %s1771_s30 = sld [smem:[#allocation2 + $0x3e]] }
  0x6f   : > { %v693_v13 = vadd.f32 %v692_v51, %v676_v3  ;;  %v629_v21 = vadd.f32 %v628_v6, %v612_v14  ;;  %v544_v25 = vmul.f32 %v1537_v50, %v543_v54  ;;  %v562_v27 = vmul.f32 %v1540_v8, %v561_v47  ;;  %s1777_s3 = sld [smem:[#allocation2 + $0x89]]  ;;  %s1780_s4 = sld [smem:[#allocation2 + $0x62]] }
  0x70   : > { %v579_v28 = vstv %s1663_s5  ;;  %v597_v30 = vstv %s1665_s6  ;;  %v679_v36 = vmul.f32 %v1613_v55, %v678_v18  ;;  %v729_v39 = vstv %s1680_s7  ;;  %s1787_s5 = sld [smem:[#allocation2 + $0x21]]  ;;  %s1790_s6 = sld [smem:[#allocation2 + $0x86]] }
  0x71   : > { %v710_v20 = vadd.f32 %v709_v2, %v693_v13  ;;  %v646_v35 = vadd.f32 %v645_v15, %v629_v21  ;;  %v580_v38 = vmul.f32 %v1546_v56, %v579_v28  ;;  %v563_v40 = vadd.f32 %v562_v27, %v544_v25  ;;  %s1795_s7 = sld [smem:[#allocation2 + $0x45]] }
  0x72   : > { %v598_v41 = vmul.f32 %v1562_v63, %v597_v30  ;;  %v614_v42 = vstv %s1682_s8  ;;  %v696_v45 = vmul.f32 %v1630_v37, %v695_v23  ;;  %v631_v49 = vstv %s1686_s10  ;;  %s1801_s8 = sld [smem:[#allocation2 + $0x69]]  ;;  %s1807_s10 = sld [smem:[#allocation2 + $0x8d]] }
  0x73   : > { %v727_v31 = vadd.f32 %v726_v34, %v710_v20  ;;  %v663_v44 = vadd.f32 %v662_v16, %v646_v35  ;;  %v794_v11 = vmul.f32 %v1717_v33, %v793_v32  ;;  %v713_v48 = vmul.f32 %v1648_v46, %v712_v24 }
  0x74   : > { %v581_v51 = vadd.f32 %v580_v38, %v563_v40  ;;  %v615_v19 = vmul.f32 %v1573_v5, %v614_v42  ;;  %v746_v59 = vstv %s1694_s11  ;;  %v648_v62 = vstv %s1696_s12  ;;  %s1064_s11 = sld [smem:[#allocation2 + $0x23]]  ;;  %s1069_s12 = sld [smem:[#allocation2 + $0x47]] }
  0x75   : > { %v744_v7 = vadd.f32 %v743_v9, %v727_v31  ;;  %v680_v58 = vadd.f32 %v679_v36, %v663_v44  ;;  %v730_v0 = vmul.f32 %v1658_v52, %v729_v39  ;;  %v763_v1 = vstv %s1700_s13  ;;  %s1074_s13 = sld [smem:[#allocation2 + $0x6b]] }
  0x76   : > { %v599_v2 = vadd.f32 %v598_v41, %v581_v51  ;;  %v632_v26 = vmul.f32 %v1587_v43, %v631_v49  ;;  %v780_v6 = vstv %s1706_s14  ;;  %v665_v29 = vstv %s1708_s15  ;;  %s1079_s14 = sld [smem:[#allocation2 + $0x8f]] }
  0x77   : > { %v761_v57 = vadd.f32 %v760_v10, %v744_v7  ;;  %v697_v4 = vadd.f32 %v696_v45, %v680_v58  ;;  %v747_v34 = vmul.f32 %v746_v59, %v1668_v60  ;;  %v649_v10 = vmul.f32 %v1597_v17, %v648_v62 }
  0x78   : > { %v616_v9 = vadd.f32 %v615_v19, %v599_v2  ;;  %v682_v13 = vstv %s1714_s16  ;;  %v797_v15 = vstv %s1720_s17  ;;  %v781_v16 = vmul.f32 %v1674_v61, %v780_v6 }
  0x79   : > { %v778_v3 = vadd.f32 %v777_v12, %v761_v57  ;;  %v714_v14 = vadd.f32 %v713_v48, %v697_v4  ;;  %v764_v12 = vmul.f32 %v1671_v22, %v763_v1  ;;  %v666_v54 = vmul.f32 %v1604_v53, %v665_v29 }
  0x7a   : > { %v633_v18 = vadd.f32 %v632_v26, %v616_v9  ;;  %v547_v47 = vstv %s1726_s18  ;;  %v683_v21 = vmul.f32 %v1613_v55, %v682_v13  ;;  %v699_v23 = vstv %s1730_s26 }
  0x7b   : > { %v795_v32 = vadd.f32 %v794_v11, %v778_v3  ;;  %v731_v20 = vadd.f32 %v730_v0, %v714_v14  ;;  %v548_v24 = vmul.f32 %v1537_v50, %v547_v47  ;;  %v565_v27 = vstv %s1732_s19 }
  0x7c   : > { %v650_v25 = vadd.f32 %v649_v10, %v633_v18  ;;  %v583_v28 = vstv %s1737_s20  ;;  %v601_v30 = vstv %s1739_s21  ;;  %v716_v35 = vstv %s1743_s22 }
  0x7d   : > { %1080 = vst [vmem:[%s1180_s29 + $0x18] sm:$0x3] %v795_v32  ;;  %v748_v31 = vadd.f32 %v747_v34, %v731_v20  ;;  %v566_v36 = vmul.f32 %v1540_v8, %v565_v27  ;;  %v584_v38 = vmul.f32 %v1546_v56, %v583_v28  ;;  %v798_v39 = vmul.f32 %v1717_v33, %v797_v15 }
  0x7e   : > { %v667_v50 = vadd.f32 %v666_v54, %v650_v25  ;;  %v700_v40 = vmul.f32 %v1630_v37, %v699_v23  ;;  %v618_v41 = vstv %s1748_s23  ;;  %v733_v7 = vstv %s1752_s24 }
  0x7f   : > { %v765_v42 = vadd.f32 %v764_v12, %v748_v31  ;;  %v567_v44 = vadd.f32 %v566_v36, %v548_v24  ;;  %v602_v8 = vmul.f32 %v1562_v63, %v601_v30  ;;  %v717_v56 = vmul.f32 %v1648_v46, %v716_v35 }
  0x80   : > { %v684_v45 = vadd.f32 %v683_v21, %v667_v50  ;;  %v635_v49 = vstv %s1757_s25  ;;  %v750_v48 = vstv %s1761_s27  ;;  %v619_v19 = vmul.f32 %v1573_v5, %v618_v41 }
  0x81   : > { %v782_v11 = vadd.f32 %v781_v16, %v765_v42  ;;  %v585_v51 = vadd.f32 %v584_v38, %v567_v44  ;;  %v734_v58 = vmul.f32 %v1658_v52, %v733_v7  ;;  %v652_v59 = vstv %s1766_s28 }
  0x82   : > { %v701_v57 = vadd.f32 %v700_v40, %v684_v45  ;;  %v767_v62 = vstv %s1771_s30  ;;  %v636_v1 = vmul.f32 %v1587_v43, %v635_v49  ;;  %v751_v26 = vmul.f32 %v750_v48, %v1668_v60 }
  0x83   : > { %v799_v63 = vadd.f32 %v798_v39, %v782_v11  ;;  %v603_v0 = vadd.f32 %v602_v8, %v585_v51  ;;  %v669_v3 = vstv %s1777_s3  ;;  %v784_v5 = vstv %s1780_s4 }
  0x84   : > { %v718_v2 = vadd.f32 %v717_v56, %v701_v57  ;;  %v653_v6 = vmul.f32 %v1597_v17, %v652_v59  ;;  %v768_v34 = vmul.f32 %v1671_v22, %v767_v62  ;;  %v686_v9 = vstv %s1787_s5 }
  0x85   : > { %1081 = vst [vmem:[%s1180_s29 + $0x1a] sm:$0x3] %v799_v63  ;;  %v620_v4 = vadd.f32 %v619_v19, %v603_v0  ;;  %v801_v10 = vstv %s1790_s6  ;;  %v670_v13 = vmul.f32 %v1604_v53, %v669_v3  ;;  %v785_v14 = vmul.f32 %v1674_v61, %v784_v5 }
  0x86   : > { %v735_v29 = vadd.f32 %v734_v58, %v718_v2  ;;  %v703_v12 = vstv %s1795_s7  ;;  %v687_v16 = vmul.f32 %v1613_v55, %v686_v9  ;;  %v802_v18 = vmul.f32 %v1717_v33, %v801_v10 }
  0x87   : > { %v637_v43 = vadd.f32 %v636_v1, %v620_v4  ;;  %v720_v54 = vstv %s1801_s8  ;;  %v704_v20 = vmul.f32 %v1630_v37, %v703_v12  ;;  %v737_v23 = vstv %s1807_s10 }
  0x88   : > { %v752_v32 = vadd.f32 %v751_v26, %v735_v29  ;;  %v721_v24 = vmul.f32 %v1648_v46, %v720_v54  ;;  %v754_v27 = vstv %s1064_s11  ;;  %v738_v55 = vmul.f32 %v1658_v52, %v737_v23 }
  0x89   : > { %v654_v15 = vadd.f32 %v653_v6, %v637_v43  ;;  %v771_v30 = vstv %s1069_s12  ;;  %v755_v35 = vmul.f32 %v754_v27, %v1668_v60  ;;  %v788_v36 = vstv %s1074_s13 }
  0x8a   : > { %v769_v17 = vadd.f32 %v768_v34, %v752_v32  ;;  %v772_v37 = vmul.f32 %v1671_v22, %v771_v30  ;;  %v805_v39 = vstv %s1079_s14  ;;  %v789_v40 = vmul.f32 %v1674_v61, %v788_v36 }
  0x8b   : > { %v671_v47 = vadd.f32 %v670_v13, %v654_v15  ;;  %v806_v41 = vmul.f32 %v1717_v33, %v805_v39 }
  0x8c   : > { %v786_v21 = vadd.f32 %v785_v14, %v769_v17 }
  0x8d   : > { %v688_v53 = vadd.f32 %v687_v16, %v671_v47 }
  0x8e   : > { %v803_v25 = vadd.f32 %v802_v18, %v786_v21 }
  0x8f   : > { %v705_v28 = vadd.f32 %v704_v20, %v688_v53 }
  0x90   : > { %1082 = vst [vmem:[%s1180_s29 + $0x1c] sm:$0x3] %v803_v25 }
  0x91   : > { %v722_v31 = vadd.f32 %v721_v24, %v705_v28 }
  0x93   : > { %v739_v38 = vadd.f32 %v738_v55, %v722_v31 }
  0x95   : > { %v756_v50 = vadd.f32 %v755_v35, %v739_v38 }
  0x97   : > { %v773_v46 = vadd.f32 %v772_v37, %v756_v50 }
  0x99   : > { %v790_v42 = vadd.f32 %v789_v40, %v773_v46 }
  0x9b   : > { %v807_v7 = vadd.f32 %v806_v41, %v790_v42 }
  0x9d   : > { %1083 = vst [vmem:[%s1180_s29 + $0x1e] sm:$0x3] %v807_v7 }
  0x9e PF: > { %s13_s9 = sadd.s32 1, %s1132_s9  }
  0x9f   : > { %p10_p1 = scmp.ge.s32.totalorder %s13_s9, 4  }
  0xa1   :  { %12 = sbr.rel (!%p10_p1) target bundleno = 1 (0x1), region = 93 }
  0xa8   :  { %837 = vsyncpa [#allocation3], 1 }
  0xa9   :  { %839 = vsyncpa [#allocation3 + $0x1], 1 }

</bundles_post_ra>
